<compile_context>
chip_gen: v7x
topology: tpu7x:2x2x1
jax: 0.10.0
libtpu: 0.0.40
codegen_flags: <defaults>
</compile_context>

<pallas_src>
import jax
import jax.numpy as jnp
from jax.experimental import pallas as pl
from jax.experimental.pallas import tpu as pltpu


def _round_up(n, m):
    return ((n + m - 1) // m) * m


# ----------------------------------------------------------------------------
# Host-side parameter packing into 3 slabs (bf16 W_ih, bf16 block-diag W_hh,
# f32 bias/fc rows).  Gate pre-activations for the g gate are pre-scaled by 2
# (exact in floating point) so the kernel uses one full-width sigmoid.
# ----------------------------------------------------------------------------
def _pack_all(params, H, L, I, future):
    FH = 4 * H
    g_scale = jnp.ones((FH,), jnp.float32).at[2 * H:3 * H].set(2.0)
    use_pred = future > 1
    layout = {}

    def scale_t(w):                      # (4H, in) -> (in, 4H), g-scaled
        return w.T * g_scale[None, :]

    def scale_b(bih, bhh):               # folded b_ih + b_hh, g-scaled
        return ((bih + bhh) * g_scale).reshape(1, FH)

    # ---- W_ih slab (bf16); each block padded to a multiple of 16 rows so
    # every static slice starts on a packed-sublane boundary ----
    wih_blocks = []

    def add_wih(name, mat):              # mat: (r, 4H) f32
        off = sum(m.shape[0] for m in wih_blocks)
        r = mat.shape[0]
        pad = _round_up(r, 16) - r
        wih_blocks.append(jnp.pad(mat, ((0, pad), (0, 0))))
        layout[name] = (off, r)

    add_wih("m_wih0", scale_t(params["lstm"][0][0]))          # (I, 4H)
    for l in range(1, L):
        add_wih(f"m_wih{l}", scale_t(params["lstm"][l][0]))   # (H, 4H)

    if use_pred:
        p0_w = scale_t(params["pred_lstm"][0][0])             # (1, 4H), I == 1
        fcw_m = params["fc_w"].reshape(1, H)
        fcw_p = params["pred_fc_w"].reshape(1, H)
        # fc folded into the prediction layer-0 input projection (rank-1, exact)
        add_wih("p_fold_m", fcw_m.T @ p0_w)                   # first future step
        add_wih("p_fold_p", fcw_p.T @ p0_w)                   # later future steps
        for l in range(1, L):
            add_wih(f"p_wih{l}", scale_t(params["pred_lstm"][l][0]))

    wih_slab = jnp.concatenate(wih_blocks, axis=0).astype(jnp.bfloat16)

    # ---- block-diagonal W_hh slab (bf16): one merged recurrent matmul/step ----
    def block_diag(stack):               # [ (H,4H) ] * L -> (L*H, L*4H)
        out = jnp.zeros((L * H, L * FH), jnp.float32)
        for l, w in enumerate(stack):
            out = out.at[l * H:(l + 1) * H, l * FH:(l + 1) * FH].set(w)
        return out

    whh_blocks = []

    def add_whh(name, mat):
        off = sum(m.shape[0] for m in whh_blocks)
        r = mat.shape[0]
        pad = _round_up(r, 16) - r
        whh_blocks.append(jnp.pad(mat, ((0, pad), (0, 0))))
        layout[name] = (off, r)

    add_whh("m_whh", block_diag([scale_t(p[1]) for p in params["lstm"]]))
    if use_pred:
        add_whh("p_whh", block_diag([scale_t(p[1]) for p in params["pred_lstm"]]))
    whh_slab = jnp.concatenate(whh_blocks, axis=0).astype(jnp.bfloat16)

    # ---- bias / fc slab (f32, one (1, 4H) row per item) ----
    rows = []

    def add_row(name, row):
        layout[name] = len(rows)
        rows.append(row)

    for l in range(L):
        add_row(f"m_b{l}", scale_b(params["lstm"][l][2], params["lstm"][l][3]))
    fc_row = jnp.zeros((1, FH), jnp.float32)
    fc_row = fc_row.at[0, :H].set(params["fc_w"].reshape(H))
    fc_row = fc_row.at[0, H].set(params["fc_b"][0])
    add_row("m_fc", fc_row)

    if use_pred:
        p_b0 = scale_b(params["pred_lstm"][0][2], params["pred_lstm"][0][3])
        p0_w = scale_t(params["pred_lstm"][0][0])             # (1, 4H)
        add_row("p_b0_fold_m", params["fc_b"].reshape(1, 1) * p0_w + p_b0)
        add_row("p_b0_fold_p", params["pred_fc_b"].reshape(1, 1) * p0_w + p_b0)
        for l in range(1, L):
            add_row(f"p_b{l}", scale_b(params["pred_lstm"][l][2],
                                       params["pred_lstm"][l][3]))
        pfc_row = jnp.zeros((1, FH), jnp.float32)
        pfc_row = pfc_row.at[0, :H].set(params["pred_fc_w"].reshape(H))
        pfc_row = pfc_row.at[0, H].set(params["pred_fc_b"][0])
        add_row("p_fc", pfc_row)

    biasfc_slab = jnp.concatenate(rows, axis=0)               # (rows, 4H) f32
    return wih_slab, whh_slab, biasfc_slab, layout


# ----------------------------------------------------------------------------
# Pallas kernel
# ----------------------------------------------------------------------------
def _make_kernel(T, B, H, L, I, future, layout):
    FH = 4 * H
    bf16 = jnp.bfloat16

    def kernel(x_ref, wih_ref, whh_ref, bfc_ref, out_ref):
        def wih(name):                                    # bf16 (r, 4H)
            off, r = layout[name]
            return wih_ref[off:off + r, :]

        def bias(name):                                   # f32 (1, 4H)
            r = layout[name]
            return bfc_ref[r:r + 1, :]

        def cell(gates, c):
            s = jax.nn.sigmoid(gates)                     # one full-width EUP op
            i = s[:, 0 * H:1 * H]
            f = s[:, 1 * H:2 * H]
            g = 2.0 * s[:, 2 * H:3 * H] - 1.0             # tanh via g pre-scale
            o = s[:, 3 * H:4 * H]
            c_new = f * c + i * g
            h_new = o * jnp.tanh(c_new)
            return h_new, c_new

        def fc(h, name):                                  # off-chain (B,1) output
            row = bfc_ref[layout[name]:layout[name] + 1, :]
            w = row[:, :H]                                # (1, H)
            b = row[:, H:H + 1]                           # (1, 1)
            return jnp.sum(h * w, axis=-1, keepdims=True) + b

        # Zero initial states, carried as register values.
        h = [jnp.zeros((B, H), jnp.float32) for _ in range(L)]
        c = [jnp.zeros((B, H), jnp.float32) for _ in range(L)]

        # ---- hoisted layer-0 input projection (+ folded bias), whole sequence,
        # dense (T*B, 4H) layout ----
        w0 = wih("m_wih0")
        b0 = bias("m_b0")
        if I == 1:
            gx0_all = x_ref[...] * w0.astype(jnp.float32) + b0
        else:
            gx0_all = jnp.dot(x_ref[...].astype(bf16), w0,
                              preferred_element_type=jnp.float32) + b0

        # Main-loop weights (live ranges end with the last main step).
        m_off, m_r = layout["m_whh"]
        m_whh = whh_ref[m_off:m_off + m_r, :]             # bf16 (L*H, L*4H)
        m_wih_l = [wih(f"m_wih{l}") for l in range(1, L)]
        m_b_l = [bias(f"m_b{l}") for l in range(1, L)]

        # ---- main LSTM recurrence, fully unrolled ----
        for t in range(T):
            # off-chain: merged recurrent projection for all layers (prev-step h)
            h_cat = jnp.concatenate(h, axis=-1).astype(bf16)       # (B, L*H)
            rec = jnp.dot(h_cat, m_whh, preferred_element_type=jnp.float32)
            h[0], c[0] = cell(gx0_all[t * B:(t + 1) * B, :] + rec[:, 0:FH], c[0])
            for l in range(1, L):
                gx = jnp.dot(h[l - 1].astype(bf16), m_wih_l[l - 1],
                             preferred_element_type=jnp.float32) + m_b_l[l - 1]
                h[l], c[l] = cell(gx + rec[:, l * FH:(l + 1) * FH], c[l])

        outs = [fc(h[L - 1], "m_fc")]                     # outputs[:, 0]

        # ---- autoregressive future steps (PredictionLSTM) ----
        if future > 1:
            p_off, p_r = layout["p_whh"]
            p_whh = whh_ref[p_off:p_off + p_r, :]
            p_fold = [wih("p_fold_m"), wih("p_fold_p")]           # (H, 4H) each
            p_fold_b = [bias("p_b0_fold_m"), bias("p_b0_fold_p")]
            p_wih_l = [wih(f"p_wih{l}") for l in range(1, L)]
            p_b_l = [bias(f"p_b{l}") for l in range(1, L)]

            for s in range(1, future):
                sel = 0 if s == 1 else 1
                # both matmuls read only previous-step state -> off-chain
                h_top_prev = h[L - 1].astype(bf16)
                h_cat = jnp.concatenate(h, axis=-1).astype(bf16)
                rec = jnp.dot(h_cat, p_whh, preferred_element_type=jnp.float32)
                # fc folded into the layer-0 input projection (exact algebra)
                gx0 = jnp.dot(h_top_prev, p_fold[sel],
                              preferred_element_type=jnp.float32) + p_fold_b[sel]
                h[0], c[0] = cell(gx0 + rec[:, 0:FH], c[0])
                for l in range(1, L):
                    gx = jnp.dot(h[l - 1].astype(bf16), p_wih_l[l - 1],
                                 preferred_element_type=jnp.float32) + p_b_l[l - 1]
                    h[l], c[l] = cell(gx + rec[:, l * FH:(l + 1) * FH], c[l])
                outs.append(fc(h[L - 1], "p_fc"))

        # single store of all output columns
        out_ref[...] = jnp.concatenate(outs, axis=-1)

    return kernel


# ----------------------------------------------------------------------------
# Parameter init (matches the PyTorch module's shapes; uniform(-k, k))
# ----------------------------------------------------------------------------
def init_params(key, input_len, hidden_size, num_layers):
    k = 1.0 / float(hidden_size) ** 0.5

    def uni(kk, shape):
        return jax.random.uniform(kk, shape, jnp.float32, -k, k)

    keys = iter(jax.random.split(key, 8 * num_layers + 4))

    def lstm_params():
        layers = []
        for l in range(num_layers):
            in_dim = input_len if l == 0 else hidden_size
            layers.append((uni(next(keys), (4 * hidden_size, in_dim)),       # W_ih
                           uni(next(keys), (4 * hidden_size, hidden_size)),  # W_hh
                           uni(next(keys), (4 * hidden_size,)),              # b_ih
                           uni(next(keys), (4 * hidden_size,))))             # b_hh
        return layers

    return {
        "lstm": lstm_params(),
        "fc_w": uni(next(keys), (1, hidden_size)),
        "fc_b": uni(next(keys), (1,)),
        "pred_lstm": lstm_params(),
        "pred_fc_w": uni(next(keys), (1, hidden_size)),
        "pred_fc_b": uni(next(keys), (1,)),
    }


# ----------------------------------------------------------------------------
# Wrapper
# ----------------------------------------------------------------------------
def pair_trading_lstm_forward(params, x, hidden_size, num_layers, future=0):
    x = x.astype(jnp.float32)
    B, T, I = x.shape
    H, L = hidden_size, num_layers
    n_out = max(1, future)
    if future > 1:
        assert I == 1, "autoregressive step feeds the scalar prediction back in"

    wih_slab, whh_slab, biasfc_slab, layout = _pack_all(params, H, L, I, future)
    x_flat = jnp.transpose(x, (1, 0, 2)).reshape(T * B, I)    # time-major, dense

    kernel = _make_kernel(T, B, H, L, I, future, layout)
    vmem = pl.BlockSpec(memory_space=pltpu.MemorySpace.VMEM)
    return pl.pallas_call(
        kernel,
        out_shape=jax.ShapeDtypeStruct((B, n_out), jnp.float32),
        in_specs=[vmem] * 4,
        out_specs=vmem,
    )(x_flat, wih_slab, whh_slab, biasfc_slab)


# ----------------------------------------------------------------------------
# Pure-JAX reference (unmodified PyTorch semantics, for verification)
# ----------------------------------------------------------------------------
def reference_forward(params, x, hidden_size, num_layers, future=0):
    x = x.astype(jnp.float32)
    B, T, _ = x.shape
    H, L = hidden_size, num_layers

    def cell(xin, hl, cl, wih, whh, bih, bhh):
        g = xin @ wih.T + bih + hl @ whh.T + bhh
        i = jax.nn.sigmoid(g[:, :H])
        f = jax.nn.sigmoid(g[:, H:2 * H])
        gg = jnp.tanh(g[:, 2 * H:3 * H])
        o = jax.nn.sigmoid(g[:, 3 * H:])
        cn = f * cl + i * gg
        return o * jnp.tanh(cn), cn

    h = [jnp.zeros((B, H), jnp.float32) for _ in range(L)]
    c = [jnp.zeros((B, H), jnp.float32) for _ in range(L)]
    for t in range(T):
        inp = x[:, t, :]
        for l in range(L):
            h[l], c[l] = cell(inp, h[l], c[l], *params["lstm"][l])
            inp = h[l]
    out = h[L - 1] @ params["fc_w"].T + params["fc_b"]
    outs = [out]
    for _ in range(future - 1):
        inp = out
        for l in range(L):
            h[l], c[l] = cell(inp, h[l], c[l], *params["pred_lstm"][l])
            inp = h[l]
        out = h[L - 1] @ params["pred_fc_w"].T + params["pred_fc_b"]
        outs.append(out)
    return jnp.concatenate(outs, axis=1)


if __name__ == "__main__":
    # small, module-consistent shapes: scalar spread series, seq=8, hidden=32
    input_len, hidden_size, num_layers = 1, 32, 2
    batch, seq, future = 2, 8, 4

    key = jax.random.PRNGKey(0)
    pkey, xkey = jax.random.split(key)
    params = init_params(pkey, input_len, hidden_size, num_layers)
    x = jax.random.normal(xkey, (batch, seq, input_len), jnp.float32)

    out = pair_trading_lstm_forward(params, x, hidden_size, num_layers,
                                    future=future)
    out = jax.block_until_ready(out)

    ref = reference_forward(params, x, hidden_size, num_layers, future=future)
    assert out.shape == (batch, max(1, future)), out.shape
    # weights are bf16 inside the kernel (f32 accumulation / state math)
    assert jnp.allclose(out, ref, atol=2e-2, rtol=2e-2), (out, ref)
    print("KERNEL_OK")
</pallas_src>

<mosaic_0001>
module attributes {stable_mosaic.version = 11 : i64} {
  func.func @kernel(%arg0: memref<16x1xf32, #tpu.memory_space<vmem>>, %arg1: memref<144x128xbf16, #tpu.memory_space<vmem>>, %arg2: memref<128x256xbf16, #tpu.memory_space<vmem>>, %arg3: memref<7x128xf32, #tpu.memory_space<vmem>>, %arg4: memref<2x4xf32, #tpu.memory_space<vmem>>) attributes {dimension_semantics = [], scalar_prefetch = 0 : i64, scratch_operands = 0 : i64, tpu.core_type = #tpu.core_type<tc>} {
    %cst = arith.constant 0.000000e+00 : f32
    %0 = vector.broadcast %cst : f32 to vector<2x32xf32>
    %cst_0 = arith.constant 0.000000e+00 : f32
    %1 = vector.broadcast %cst_0 : f32 to vector<2x32xf32>
    %cst_1 = arith.constant 0.000000e+00 : f32
    %2 = vector.broadcast %cst_1 : f32 to vector<2x32xf32>
    %cst_2 = arith.constant 0.000000e+00 : f32
    %3 = vector.broadcast %cst_2 : f32 to vector<2x32xf32>
    %c0 = arith.constant 0 : index
    %c0_3 = arith.constant 0 : index
    %4 = vector.load %arg1[%c0, %c0_3] : memref<144x128xbf16, #tpu.memory_space<vmem>>, vector<1x128xbf16>
    %c0_4 = arith.constant 0 : index
    %c0_5 = arith.constant 0 : index
    %5 = vector.load %arg3[%c0_4, %c0_5] : memref<7x128xf32, #tpu.memory_space<vmem>>, vector<1x128xf32>
    %c0_6 = arith.constant 0 : index
    %c0_7 = arith.constant 0 : index
    %6 = vector.load %arg0[%c0_6, %c0_7] : memref<16x1xf32, #tpu.memory_space<vmem>>, vector<16x1xf32>
    %7 = arith.extf %4 : vector<1x128xbf16> to vector<1x128xf32>
    %8 = vector.broadcast %6 : vector<16x1xf32> to vector<16x128xf32>
    %9 = vector.broadcast %7 : vector<1x128xf32> to vector<16x128xf32>
    %10 = arith.mulf %8, %9 : vector<16x128xf32>
    %11 = vector.broadcast %5 : vector<1x128xf32> to vector<16x128xf32>
    %12 = arith.addf %10, %11 : vector<16x128xf32>
    %c0_8 = arith.constant 0 : index
    %c0_9 = arith.constant 0 : index
    %13 = vector.load %arg2[%c0_8, %c0_9] : memref<128x256xbf16, #tpu.memory_space<vmem>>, vector<64x256xbf16>
    %c16 = arith.constant 16 : index
    %c0_10 = arith.constant 0 : index
    %14 = vector.load %arg1[%c16, %c0_10] : memref<144x128xbf16, #tpu.memory_space<vmem>>, vector<32x128xbf16>
    %c1 = arith.constant 1 : index
    %c0_11 = arith.constant 0 : index
    %15 = vector.load %arg3[%c1, %c0_11] : memref<7x128xf32, #tpu.memory_space<vmem>>, vector<1x128xf32>
    %16 = tpu.concatenate %0, %1 in 1 : vector<2x32xf32>, vector<2x32xf32> -> vector<2x64xf32>
    %17 = arith.truncf %16 : vector<2x64xf32> to vector<2x64xbf16>
    %cst_12 = arith.constant dense<0.000000e+00> : vector<2x256xf32>
    %18 = tpu.matmul %17, %13, %cst_12 {dimension_numbers = #tpu.dot_dimension_numbers<[1], [0], [0], [1], [0, 0, 1, 1], [], []>} : vector<2x64xbf16>, vector<64x256xbf16>, vector<2x256xf32> -> vector<2x256xf32>
    %19 = vector.extract_strided_slice %12 {offsets = [0, 0], sizes = [2, 128], strides = [1, 1]} : vector<16x128xf32> to vector<2x128xf32>
    %20 = vector.extract_strided_slice %18 {offsets = [0, 0], sizes = [2, 128], strides = [1, 1]} : vector<2x256xf32> to vector<2x128xf32>
    %21 = arith.addf %19, %20 : vector<2x128xf32>
    %22 = arith.negf %21 : vector<2x128xf32>
    %23 = math.exp %22 : vector<2x128xf32>
    %cst_13 = arith.constant 1.000000e+00 : f32
    %24 = vector.broadcast %cst_13 : f32 to vector<2x128xf32>
    %25 = arith.addf %24, %23 : vector<2x128xf32>
    %26 = arith.divf %24, %25 : vector<2x128xf32>
    %27 = vector.extract_strided_slice %26 {offsets = [0, 0], sizes = [2, 32], strides = [1, 1]} : vector<2x128xf32> to vector<2x32xf32>
    %28 = vector.extract_strided_slice %26 {offsets = [0, 32], sizes = [2, 32], strides = [1, 1]} : vector<2x128xf32> to vector<2x32xf32>
    %29 = vector.extract_strided_slice %26 {offsets = [0, 64], sizes = [2, 32], strides = [1, 1]} : vector<2x128xf32> to vector<2x32xf32>
    %cst_14 = arith.constant 2.000000e+00 : f32
    %30 = vector.broadcast %cst_14 : f32 to vector<2x32xf32>
    %31 = arith.mulf %30, %29 : vector<2x32xf32>
    %cst_15 = arith.constant 1.000000e+00 : f32
    %32 = vector.broadcast %cst_15 : f32 to vector<2x32xf32>
    %33 = arith.subf %31, %32 : vector<2x32xf32>
    %34 = vector.extract_strided_slice %26 {offsets = [0, 96], sizes = [2, 32], strides = [1, 1]} : vector<2x128xf32> to vector<2x32xf32>
    %35 = arith.mulf %28, %2 : vector<2x32xf32>
    %36 = arith.mulf %27, %33 : vector<2x32xf32>
    %37 = arith.addf %35, %36 : vector<2x32xf32>
    %38 = math.tanh %37 : vector<2x32xf32>
    %39 = arith.mulf %34, %38 : vector<2x32xf32>
    %40 = arith.truncf %39 : vector<2x32xf32> to vector<2x32xbf16>
    %cst_16 = arith.constant dense<0.000000e+00> : vector<2x128xf32>
    %41 = tpu.matmul %40, %14, %cst_16 {dimension_numbers = #tpu.dot_dimension_numbers<[1], [0], [0], [1], [0, 0, 1, 1], [], []>} : vector<2x32xbf16>, vector<32x128xbf16>, vector<2x128xf32> -> vector<2x128xf32>
    %42 = vector.broadcast %15 : vector<1x128xf32> to vector<2x128xf32>
    %43 = arith.addf %41, %42 : vector<2x128xf32>
    %44 = vector.extract_strided_slice %18 {offsets = [0, 128], sizes = [2, 128], strides = [1, 1]} : vector<2x256xf32> to vector<2x128xf32>
    %45 = arith.addf %43, %44 : vector<2x128xf32>
    %46 = arith.negf %45 : vector<2x128xf32>
    %47 = math.exp %46 : vector<2x128xf32>
    %cst_17 = arith.constant 1.000000e+00 : f32
    %48 = vector.broadcast %cst_17 : f32 to vector<2x128xf32>
    %49 = arith.addf %48, %47 : vector<2x128xf32>
    %50 = arith.divf %48, %49 : vector<2x128xf32>
    %51 = vector.extract_strided_slice %50 {offsets = [0, 0], sizes = [2, 32], strides = [1, 1]} : vector<2x128xf32> to vector<2x32xf32>
    %52 = vector.extract_strided_slice %50 {offsets = [0, 32], sizes = [2, 32], strides = [1, 1]} : vector<2x128xf32> to vector<2x32xf32>
    %53 = vector.extract_strided_slice %50 {offsets = [0, 64], sizes = [2, 32], strides = [1, 1]} : vector<2x128xf32> to vector<2x32xf32>
    %cst_18 = arith.constant 2.000000e+00 : f32
    %54 = vector.broadcast %cst_18 : f32 to vector<2x32xf32>
    %55 = arith.mulf %54, %53 : vector<2x32xf32>
    %cst_19 = arith.constant 1.000000e+00 : f32
    %56 = vector.broadcast %cst_19 : f32 to vector<2x32xf32>
    %57 = arith.subf %55, %56 : vector<2x32xf32>
    %58 = vector.extract_strided_slice %50 {offsets = [0, 96], sizes = [2, 32], strides = [1, 1]} : vector<2x128xf32> to vector<2x32xf32>
    %59 = arith.mulf %52, %3 : vector<2x32xf32>
    %60 = arith.mulf %51, %57 : vector<2x32xf32>
    %61 = arith.addf %59, %60 : vector<2x32xf32>
    %62 = math.tanh %61 : vector<2x32xf32>
    %63 = arith.mulf %58, %62 : vector<2x32xf32>
    %64 = tpu.concatenate %39, %63 in 1 : vector<2x32xf32>, vector<2x32xf32> -> vector<2x64xf32>
    %65 = arith.truncf %64 : vector<2x64xf32> to vector<2x64xbf16>
    %cst_20 = arith.constant dense<0.000000e+00> : vector<2x256xf32>
    %66 = tpu.matmul %65, %13, %cst_20 {dimension_numbers = #tpu.dot_dimension_numbers<[1], [0], [0], [1], [0, 0, 1, 1], [], []>} : vector<2x64xbf16>, vector<64x256xbf16>, vector<2x256xf32> -> vector<2x256xf32>
    %67 = vector.extract_strided_slice %12 {offsets = [2, 0], sizes = [2, 128], strides = [1, 1]} : vector<16x128xf32> to vector<2x128xf32>
    %68 = vector.extract_strided_slice %66 {offsets = [0, 0], sizes = [2, 128], strides = [1, 1]} : vector<2x256xf32> to vector<2x128xf32>
    %69 = arith.addf %67, %68 : vector<2x128xf32>
    %70 = arith.negf %69 : vector<2x128xf32>
    %71 = math.exp %70 : vector<2x128xf32>
    %cst_21 = arith.constant 1.000000e+00 : f32
    %72 = vector.broadcast %cst_21 : f32 to vector<2x128xf32>
    %73 = arith.addf %72, %71 : vector<2x128xf32>
    %74 = arith.divf %72, %73 : vector<2x128xf32>
    %75 = vector.extract_strided_slice %74 {offsets = [0, 0], sizes = [2, 32], strides = [1, 1]} : vector<2x128xf32> to vector<2x32xf32>
    %76 = vector.extract_strided_slice %74 {offsets = [0, 32], sizes = [2, 32], strides = [1, 1]} : vector<2x128xf32> to vector<2x32xf32>
    %77 = vector.extract_strided_slice %74 {offsets = [0, 64], sizes = [2, 32], strides = [1, 1]} : vector<2x128xf32> to vector<2x32xf32>
    %cst_22 = arith.constant 2.000000e+00 : f32
    %78 = vector.broadcast %cst_22 : f32 to vector<2x32xf32>
    %79 = arith.mulf %78, %77 : vector<2x32xf32>
    %cst_23 = arith.constant 1.000000e+00 : f32
    %80 = vector.broadcast %cst_23 : f32 to vector<2x32xf32>
    %81 = arith.subf %79, %80 : vector<2x32xf32>
    %82 = vector.extract_strided_slice %74 {offsets = [0, 96], sizes = [2, 32], strides = [1, 1]} : vector<2x128xf32> to vector<2x32xf32>
    %83 = arith.mulf %76, %37 : vector<2x32xf32>
    %84 = arith.mulf %75, %81 : vector<2x32xf32>
    %85 = arith.addf %83, %84 : vector<2x32xf32>
    %86 = math.tanh %85 : vector<2x32xf32>
    %87 = arith.mulf %82, %86 : vector<2x32xf32>
    %88 = arith.truncf %87 : vector<2x32xf32> to vector<2x32xbf16>
    %cst_24 = arith.constant dense<0.000000e+00> : vector<2x128xf32>
    %89 = tpu.matmul %88, %14, %cst_24 {dimension_numbers = #tpu.dot_dimension_numbers<[1], [0], [0], [1], [0, 0, 1, 1], [], []>} : vector<2x32xbf16>, vector<32x128xbf16>, vector<2x128xf32> -> vector<2x128xf32>
    %90 = vector.broadcast %15 : vector<1x128xf32> to vector<2x128xf32>
    %91 = arith.addf %89, %90 : vector<2x128xf32>
    %92 = vector.extract_strided_slice %66 {offsets = [0, 128], sizes = [2, 128], strides = [1, 1]} : vector<2x256xf32> to vector<2x128xf32>
    %93 = arith.addf %91, %92 : vector<2x128xf32>
    %94 = arith.negf %93 : vector<2x128xf32>
    %95 = math.exp %94 : vector<2x128xf32>
    %cst_25 = arith.constant 1.000000e+00 : f32
    %96 = vector.broadcast %cst_25 : f32 to vector<2x128xf32>
    %97 = arith.addf %96, %95 : vector<2x128xf32>
    %98 = arith.divf %96, %97 : vector<2x128xf32>
    %99 = vector.extract_strided_slice %98 {offsets = [0, 0], sizes = [2, 32], strides = [1, 1]} : vector<2x128xf32> to vector<2x32xf32>
    %100 = vector.extract_strided_slice %98 {offsets = [0, 32], sizes = [2, 32], strides = [1, 1]} : vector<2x128xf32> to vector<2x32xf32>
    %101 = vector.extract_strided_slice %98 {offsets = [0, 64], sizes = [2, 32], strides = [1, 1]} : vector<2x128xf32> to vector<2x32xf32>
    %cst_26 = arith.constant 2.000000e+00 : f32
    %102 = vector.broadcast %cst_26 : f32 to vector<2x32xf32>
    %103 = arith.mulf %102, %101 : vector<2x32xf32>
    %cst_27 = arith.constant 1.000000e+00 : f32
    %104 = vector.broadcast %cst_27 : f32 to vector<2x32xf32>
    %105 = arith.subf %103, %104 : vector<2x32xf32>
    %106 = vector.extract_strided_slice %98 {offsets = [0, 96], sizes = [2, 32], strides = [1, 1]} : vector<2x128xf32> to vector<2x32xf32>
    %107 = arith.mulf %100, %61 : vector<2x32xf32>
    %108 = arith.mulf %99, %105 : vector<2x32xf32>
    %109 = arith.addf %107, %108 : vector<2x32xf32>
    %110 = math.tanh %109 : vector<2x32xf32>
    %111 = arith.mulf %106, %110 : vector<2x32xf32>
    %112 = tpu.concatenate %87, %111 in 1 : vector<2x32xf32>, vector<2x32xf32> -> vector<2x64xf32>
    %113 = arith.truncf %112 : vector<2x64xf32> to vector<2x64xbf16>
    %cst_28 = arith.constant dense<0.000000e+00> : vector<2x256xf32>
    %114 = tpu.matmul %113, %13, %cst_28 {dimension_numbers = #tpu.dot_dimension_numbers<[1], [0], [0], [1], [0, 0, 1, 1], [], []>} : vector<2x64xbf16>, vector<64x256xbf16>, vector<2x256xf32> -> vector<2x256xf32>
    %115 = vector.extract_strided_slice %12 {offsets = [4, 0], sizes = [2, 128], strides = [1, 1]} : vector<16x128xf32> to vector<2x128xf32>
    %116 = vector.extract_strided_slice %114 {offsets = [0, 0], sizes = [2, 128], strides = [1, 1]} : vector<2x256xf32> to vector<2x128xf32>
    %117 = arith.addf %115, %116 : vector<2x128xf32>
    %118 = arith.negf %117 : vector<2x128xf32>
    %119 = math.exp %118 : vector<2x128xf32>
    %cst_29 = arith.constant 1.000000e+00 : f32
    %120 = vector.broadcast %cst_29 : f32 to vector<2x128xf32>
    %121 = arith.addf %120, %119 : vector<2x128xf32>
    %122 = arith.divf %120, %121 : vector<2x128xf32>
    %123 = vector.extract_strided_slice %122 {offsets = [0, 0], sizes = [2, 32], strides = [1, 1]} : vector<2x128xf32> to vector<2x32xf32>
    %124 = vector.extract_strided_slice %122 {offsets = [0, 32], sizes = [2, 32], strides = [1, 1]} : vector<2x128xf32> to vector<2x32xf32>
    %125 = vector.extract_strided_slice %122 {offsets = [0, 64], sizes = [2, 32], strides = [1, 1]} : vector<2x128xf32> to vector<2x32xf32>
    %cst_30 = arith.constant 2.000000e+00 : f32
    %126 = vector.broadcast %cst_30 : f32 to vector<2x32xf32>
    %127 = arith.mulf %126, %125 : vector<2x32xf32>
    %cst_31 = arith.constant 1.000000e+00 : f32
    %128 = vector.broadcast %cst_31 : f32 to vector<2x32xf32>
    %129 = arith.subf %127, %128 : vector<2x32xf32>
    %130 = vector.extract_strided_slice %122 {offsets = [0, 96], sizes = [2, 32], strides = [1, 1]} : vector<2x128xf32> to vector<2x32xf32>
    %131 = arith.mulf %124, %85 : vector<2x32xf32>
    %132 = arith.mulf %123, %129 : vector<2x32xf32>
    %133 = arith.addf %131, %132 : vector<2x32xf32>
    %134 = math.tanh %133 : vector<2x32xf32>
    %135 = arith.mulf %130, %134 : vector<2x32xf32>
    %136 = arith.truncf %135 : vector<2x32xf32> to vector<2x32xbf16>
    %cst_32 = arith.constant dense<0.000000e+00> : vector<2x128xf32>
    %137 = tpu.matmul %136, %14, %cst_32 {dimension_numbers = #tpu.dot_dimension_numbers<[1], [0], [0], [1], [0, 0, 1, 1], [], []>} : vector<2x32xbf16>, vector<32x128xbf16>, vector<2x128xf32> -> vector<2x128xf32>
    %138 = vector.broadcast %15 : vector<1x128xf32> to vector<2x128xf32>
    %139 = arith.addf %137, %138 : vector<2x128xf32>
    %140 = vector.extract_strided_slice %114 {offsets = [0, 128], sizes = [2, 128], strides = [1, 1]} : vector<2x256xf32> to vector<2x128xf32>
    %141 = arith.addf %139, %140 : vector<2x128xf32>
    %142 = arith.negf %141 : vector<2x128xf32>
    %143 = math.exp %142 : vector<2x128xf32>
    %cst_33 = arith.constant 1.000000e+00 : f32
    %144 = vector.broadcast %cst_33 : f32 to vector<2x128xf32>
    %145 = arith.addf %144, %143 : vector<2x128xf32>
    %146 = arith.divf %144, %145 : vector<2x128xf32>
    %147 = vector.extract_strided_slice %146 {offsets = [0, 0], sizes = [2, 32], strides = [1, 1]} : vector<2x128xf32> to vector<2x32xf32>
    %148 = vector.extract_strided_slice %146 {offsets = [0, 32], sizes = [2, 32], strides = [1, 1]} : vector<2x128xf32> to vector<2x32xf32>
    %149 = vector.extract_strided_slice %146 {offsets = [0, 64], sizes = [2, 32], strides = [1, 1]} : vector<2x128xf32> to vector<2x32xf32>
    %cst_34 = arith.constant 2.000000e+00 : f32
    %150 = vector.broadcast %cst_34 : f32 to vector<2x32xf32>
    %151 = arith.mulf %150, %149 : vector<2x32xf32>
    %cst_35 = arith.constant 1.000000e+00 : f32
    %152 = vector.broadcast %cst_35 : f32 to vector<2x32xf32>
    %153 = arith.subf %151, %152 : vector<2x32xf32>
    %154 = vector.extract_strided_slice %146 {offsets = [0, 96], sizes = [2, 32], strides = [1, 1]} : vector<2x128xf32> to vector<2x32xf32>
    %155 = arith.mulf %148, %109 : vector<2x32xf32>
    %156 = arith.mulf %147, %153 : vector<2x32xf32>
    %157 = arith.addf %155, %156 : vector<2x32xf32>
    %158 = math.tanh %157 : vector<2x32xf32>
    %159 = arith.mulf %154, %158 : vector<2x32xf32>
    %160 = tpu.concatenate %135, %159 in 1 : vector<2x32xf32>, vector<2x32xf32> -> vector<2x64xf32>
    %161 = arith.truncf %160 : vector<2x64xf32> to vector<2x64xbf16>
    %cst_36 = arith.constant dense<0.000000e+00> : vector<2x256xf32>
    %162 = tpu.matmul %161, %13, %cst_36 {dimension_numbers = #tpu.dot_dimension_numbers<[1], [0], [0], [1], [0, 0, 1, 1], [], []>} : vector<2x64xbf16>, vector<64x256xbf16>, vector<2x256xf32> -> vector<2x256xf32>
    %163 = vector.extract_strided_slice %12 {offsets = [6, 0], sizes = [2, 128], strides = [1, 1]} : vector<16x128xf32> to vector<2x128xf32>
    %164 = vector.extract_strided_slice %162 {offsets = [0, 0], sizes = [2, 128], strides = [1, 1]} : vector<2x256xf32> to vector<2x128xf32>
    %165 = arith.addf %163, %164 : vector<2x128xf32>
    %166 = arith.negf %165 : vector<2x128xf32>
    %167 = math.exp %166 : vector<2x128xf32>
    %cst_37 = arith.constant 1.000000e+00 : f32
    %168 = vector.broadcast %cst_37 : f32 to vector<2x128xf32>
    %169 = arith.addf %168, %167 : vector<2x128xf32>
    %170 = arith.divf %168, %169 : vector<2x128xf32>
    %171 = vector.extract_strided_slice %170 {offsets = [0, 0], sizes = [2, 32], strides = [1, 1]} : vector<2x128xf32> to vector<2x32xf32>
    %172 = vector.extract_strided_slice %170 {offsets = [0, 32], sizes = [2, 32], strides = [1, 1]} : vector<2x128xf32> to vector<2x32xf32>
    %173 = vector.extract_strided_slice %170 {offsets = [0, 64], sizes = [2, 32], strides = [1, 1]} : vector<2x128xf32> to vector<2x32xf32>
    %cst_38 = arith.constant 2.000000e+00 : f32
    %174 = vector.broadcast %cst_38 : f32 to vector<2x32xf32>
    %175 = arith.mulf %174, %173 : vector<2x32xf32>
    %cst_39 = arith.constant 1.000000e+00 : f32
    %176 = vector.broadcast %cst_39 : f32 to vector<2x32xf32>
    %177 = arith.subf %175, %176 : vector<2x32xf32>
    %178 = vector.extract_strided_slice %170 {offsets = [0, 96], sizes = [2, 32], strides = [1, 1]} : vector<2x128xf32> to vector<2x32xf32>
    %179 = arith.mulf %172, %133 : vector<2x32xf32>
    %180 = arith.mulf %171, %177 : vector<2x32xf32>
    %181 = arith.addf %179, %180 : vector<2x32xf32>
    %182 = math.tanh %181 : vector<2x32xf32>
    %183 = arith.mulf %178, %182 : vector<2x32xf32>
    %184 = arith.truncf %183 : vector<2x32xf32> to vector<2x32xbf16>
    %cst_40 = arith.constant dense<0.000000e+00> : vector<2x128xf32>
    %185 = tpu.matmul %184, %14, %cst_40 {dimension_numbers = #tpu.dot_dimension_numbers<[1], [0], [0], [1], [0, 0, 1, 1], [], []>} : vector<2x32xbf16>, vector<32x128xbf16>, vector<2x128xf32> -> vector<2x128xf32>
    %186 = vector.broadcast %15 : vector<1x128xf32> to vector<2x128xf32>
    %187 = arith.addf %185, %186 : vector<2x128xf32>
    %188 = vector.extract_strided_slice %162 {offsets = [0, 128], sizes = [2, 128], strides = [1, 1]} : vector<2x256xf32> to vector<2x128xf32>
    %189 = arith.addf %187, %188 : vector<2x128xf32>
    %190 = arith.negf %189 : vector<2x128xf32>
    %191 = math.exp %190 : vector<2x128xf32>
    %cst_41 = arith.constant 1.000000e+00 : f32
    %192 = vector.broadcast %cst_41 : f32 to vector<2x128xf32>
    %193 = arith.addf %192, %191 : vector<2x128xf32>
    %194 = arith.divf %192, %193 : vector<2x128xf32>
    %195 = vector.extract_strided_slice %194 {offsets = [0, 0], sizes = [2, 32], strides = [1, 1]} : vector<2x128xf32> to vector<2x32xf32>
    %196 = vector.extract_strided_slice %194 {offsets = [0, 32], sizes = [2, 32], strides = [1, 1]} : vector<2x128xf32> to vector<2x32xf32>
    %197 = vector.extract_strided_slice %194 {offsets = [0, 64], sizes = [2, 32], strides = [1, 1]} : vector<2x128xf32> to vector<2x32xf32>
    %cst_42 = arith.constant 2.000000e+00 : f32
    %198 = vector.broadcast %cst_42 : f32 to vector<2x32xf32>
    %199 = arith.mulf %198, %197 : vector<2x32xf32>
    %cst_43 = arith.constant 1.000000e+00 : f32
    %200 = vector.broadcast %cst_43 : f32 to vector<2x32xf32>
    %201 = arith.subf %199, %200 : vector<2x32xf32>
    %202 = vector.extract_strided_slice %194 {offsets = [0, 96], sizes = [2, 32], strides = [1, 1]} : vector<2x128xf32> to vector<2x32xf32>
    %203 = arith.mulf %196, %157 : vector<2x32xf32>
    %204 = arith.mulf %195, %201 : vector<2x32xf32>
    %205 = arith.addf %203, %204 : vector<2x32xf32>
    %206 = math.tanh %205 : vector<2x32xf32>
    %207 = arith.mulf %202, %206 : vector<2x32xf32>
    %208 = tpu.concatenate %183, %207 in 1 : vector<2x32xf32>, vector<2x32xf32> -> vector<2x64xf32>
    %209 = arith.truncf %208 : vector<2x64xf32> to vector<2x64xbf16>
    %cst_44 = arith.constant dense<0.000000e+00> : vector<2x256xf32>
    %210 = tpu.matmul %209, %13, %cst_44 {dimension_numbers = #tpu.dot_dimension_numbers<[1], [0], [0], [1], [0, 0, 1, 1], [], []>} : vector<2x64xbf16>, vector<64x256xbf16>, vector<2x256xf32> -> vector<2x256xf32>
    %211 = vector.extract_strided_slice %12 {offsets = [8, 0], sizes = [2, 128], strides = [1, 1]} : vector<16x128xf32> to vector<2x128xf32>
    %212 = vector.extract_strided_slice %210 {offsets = [0, 0], sizes = [2, 128], strides = [1, 1]} : vector<2x256xf32> to vector<2x128xf32>
    %213 = arith.addf %211, %212 : vector<2x128xf32>
    %214 = arith.negf %213 : vector<2x128xf32>
    %215 = math.exp %214 : vector<2x128xf32>
    %cst_45 = arith.constant 1.000000e+00 : f32
    %216 = vector.broadcast %cst_45 : f32 to vector<2x128xf32>
    %217 = arith.addf %216, %215 : vector<2x128xf32>
    %218 = arith.divf %216, %217 : vector<2x128xf32>
    %219 = vector.extract_strided_slice %218 {offsets = [0, 0], sizes = [2, 32], strides = [1, 1]} : vector<2x128xf32> to vector<2x32xf32>
    %220 = vector.extract_strided_slice %218 {offsets = [0, 32], sizes = [2, 32], strides = [1, 1]} : vector<2x128xf32> to vector<2x32xf32>
    %221 = vector.extract_strided_slice %218 {offsets = [0, 64], sizes = [2, 32], strides = [1, 1]} : vector<2x128xf32> to vector<2x32xf32>
    %cst_46 = arith.constant 2.000000e+00 : f32
    %222 = vector.broadcast %cst_46 : f32 to vector<2x32xf32>
    %223 = arith.mulf %222, %221 : vector<2x32xf32>
    %cst_47 = arith.constant 1.000000e+00 : f32
    %224 = vector.broadcast %cst_47 : f32 to vector<2x32xf32>
    %225 = arith.subf %223, %224 : vector<2x32xf32>
    %226 = vector.extract_strided_slice %218 {offsets = [0, 96], sizes = [2, 32], strides = [1, 1]} : vector<2x128xf32> to vector<2x32xf32>
    %227 = arith.mulf %220, %181 : vector<2x32xf32>
    %228 = arith.mulf %219, %225 : vector<2x32xf32>
    %229 = arith.addf %227, %228 : vector<2x32xf32>
    %230 = math.tanh %229 : vector<2x32xf32>
    %231 = arith.mulf %226, %230 : vector<2x32xf32>
    %232 = arith.truncf %231 : vector<2x32xf32> to vector<2x32xbf16>
    %cst_48 = arith.constant dense<0.000000e+00> : vector<2x128xf32>
    %233 = tpu.matmul %232, %14, %cst_48 {dimension_numbers = #tpu.dot_dimension_numbers<[1], [0], [0], [1], [0, 0, 1, 1], [], []>} : vector<2x32xbf16>, vector<32x128xbf16>, vector<2x128xf32> -> vector<2x128xf32>
    %234 = vector.broadcast %15 : vector<1x128xf32> to vector<2x128xf32>
    %235 = arith.addf %233, %234 : vector<2x128xf32>
    %236 = vector.extract_strided_slice %210 {offsets = [0, 128], sizes = [2, 128], strides = [1, 1]} : vector<2x256xf32> to vector<2x128xf32>
    %237 = arith.addf %235, %236 : vector<2x128xf32>
    %238 = arith.negf %237 : vector<2x128xf32>
    %239 = math.exp %238 : vector<2x128xf32>
    %cst_49 = arith.constant 1.000000e+00 : f32
    %240 = vector.broadcast %cst_49 : f32 to vector<2x128xf32>
    %241 = arith.addf %240, %239 : vector<2x128xf32>
    %242 = arith.divf %240, %241 : vector<2x128xf32>
    %243 = vector.extract_strided_slice %242 {offsets = [0, 0], sizes = [2, 32], strides = [1, 1]} : vector<2x128xf32> to vector<2x32xf32>
    %244 = vector.extract_strided_slice %242 {offsets = [0, 32], sizes = [2, 32], strides = [1, 1]} : vector<2x128xf32> to vector<2x32xf32>
    %245 = vector.extract_strided_slice %242 {offsets = [0, 64], sizes = [2, 32], strides = [1, 1]} : vector<2x128xf32> to vector<2x32xf32>
    %cst_50 = arith.constant 2.000000e+00 : f32
    %246 = vector.broadcast %cst_50 : f32 to vector<2x32xf32>
    %247 = arith.mulf %246, %245 : vector<2x32xf32>
    %cst_51 = arith.constant 1.000000e+00 : f32
    %248 = vector.broadcast %cst_51 : f32 to vector<2x32xf32>
    %249 = arith.subf %247, %248 : vector<2x32xf32>
    %250 = vector.extract_strided_slice %242 {offsets = [0, 96], sizes = [2, 32], strides = [1, 1]} : vector<2x128xf32> to vector<2x32xf32>
    %251 = arith.mulf %244, %205 : vector<2x32xf32>
    %252 = arith.mulf %243, %249 : vector<2x32xf32>
    %253 = arith.addf %251, %252 : vector<2x32xf32>
    %254 = math.tanh %253 : vector<2x32xf32>
    %255 = arith.mulf %250, %254 : vector<2x32xf32>
    %256 = tpu.concatenate %231, %255 in 1 : vector<2x32xf32>, vector<2x32xf32> -> vector<2x64xf32>
    %257 = arith.truncf %256 : vector<2x64xf32> to vector<2x64xbf16>
    %cst_52 = arith.constant dense<0.000000e+00> : vector<2x256xf32>
    %258 = tpu.matmul %257, %13, %cst_52 {dimension_numbers = #tpu.dot_dimension_numbers<[1], [0], [0], [1], [0, 0, 1, 1], [], []>} : vector<2x64xbf16>, vector<64x256xbf16>, vector<2x256xf32> -> vector<2x256xf32>
    %259 = vector.extract_strided_slice %12 {offsets = [10, 0], sizes = [2, 128], strides = [1, 1]} : vector<16x128xf32> to vector<2x128xf32>
    %260 = vector.extract_strided_slice %258 {offsets = [0, 0], sizes = [2, 128], strides = [1, 1]} : vector<2x256xf32> to vector<2x128xf32>
    %261 = arith.addf %259, %260 : vector<2x128xf32>
    %262 = arith.negf %261 : vector<2x128xf32>
    %263 = math.exp %262 : vector<2x128xf32>
    %cst_53 = arith.constant 1.000000e+00 : f32
    %264 = vector.broadcast %cst_53 : f32 to vector<2x128xf32>
    %265 = arith.addf %264, %263 : vector<2x128xf32>
    %266 = arith.divf %264, %265 : vector<2x128xf32>
    %267 = vector.extract_strided_slice %266 {offsets = [0, 0], sizes = [2, 32], strides = [1, 1]} : vector<2x128xf32> to vector<2x32xf32>
    %268 = vector.extract_strided_slice %266 {offsets = [0, 32], sizes = [2, 32], strides = [1, 1]} : vector<2x128xf32> to vector<2x32xf32>
    %269 = vector.extract_strided_slice %266 {offsets = [0, 64], sizes = [2, 32], strides = [1, 1]} : vector<2x128xf32> to vector<2x32xf32>
    %cst_54 = arith.constant 2.000000e+00 : f32
    %270 = vector.broadcast %cst_54 : f32 to vector<2x32xf32>
    %271 = arith.mulf %270, %269 : vector<2x32xf32>
    %cst_55 = arith.constant 1.000000e+00 : f32
    %272 = vector.broadcast %cst_55 : f32 to vector<2x32xf32>
    %273 = arith.subf %271, %272 : vector<2x32xf32>
    %274 = vector.extract_strided_slice %266 {offsets = [0, 96], sizes = [2, 32], strides = [1, 1]} : vector<2x128xf32> to vector<2x32xf32>
    %275 = arith.mulf %268, %229 : vector<2x32xf32>
    %276 = arith.mulf %267, %273 : vector<2x32xf32>
    %277 = arith.addf %275, %276 : vector<2x32xf32>
    %278 = math.tanh %277 : vector<2x32xf32>
    %279 = arith.mulf %274, %278 : vector<2x32xf32>
    %280 = arith.truncf %279 : vector<2x32xf32> to vector<2x32xbf16>
    %cst_56 = arith.constant dense<0.000000e+00> : vector<2x128xf32>
    %281 = tpu.matmul %280, %14, %cst_56 {dimension_numbers = #tpu.dot_dimension_numbers<[1], [0], [0], [1], [0, 0, 1, 1], [], []>} : vector<2x32xbf16>, vector<32x128xbf16>, vector<2x128xf32> -> vector<2x128xf32>
    %282 = vector.broadcast %15 : vector<1x128xf32> to vector<2x128xf32>
    %283 = arith.addf %281, %282 : vector<2x128xf32>
    %284 = vector.extract_strided_slice %258 {offsets = [0, 128], sizes = [2, 128], strides = [1, 1]} : vector<2x256xf32> to vector<2x128xf32>
    %285 = arith.addf %283, %284 : vector<2x128xf32>
    %286 = arith.negf %285 : vector<2x128xf32>
    %287 = math.exp %286 : vector<2x128xf32>
    %cst_57 = arith.constant 1.000000e+00 : f32
    %288 = vector.broadcast %cst_57 : f32 to vector<2x128xf32>
    %289 = arith.addf %288, %287 : vector<2x128xf32>
    %290 = arith.divf %288, %289 : vector<2x128xf32>
    %291 = vector.extract_strided_slice %290 {offsets = [0, 0], sizes = [2, 32], strides = [1, 1]} : vector<2x128xf32> to vector<2x32xf32>
    %292 = vector.extract_strided_slice %290 {offsets = [0, 32], sizes = [2, 32], strides = [1, 1]} : vector<2x128xf32> to vector<2x32xf32>
    %293 = vector.extract_strided_slice %290 {offsets = [0, 64], sizes = [2, 32], strides = [1, 1]} : vector<2x128xf32> to vector<2x32xf32>
    %cst_58 = arith.constant 2.000000e+00 : f32
    %294 = vector.broadcast %cst_58 : f32 to vector<2x32xf32>
    %295 = arith.mulf %294, %293 : vector<2x32xf32>
    %cst_59 = arith.constant 1.000000e+00 : f32
    %296 = vector.broadcast %cst_59 : f32 to vector<2x32xf32>
    %297 = arith.subf %295, %296 : vector<2x32xf32>
    %298 = vector.extract_strided_slice %290 {offsets = [0, 96], sizes = [2, 32], strides = [1, 1]} : vector<2x128xf32> to vector<2x32xf32>
    %299 = arith.mulf %292, %253 : vector<2x32xf32>
    %300 = arith.mulf %291, %297 : vector<2x32xf32>
    %301 = arith.addf %299, %300 : vector<2x32xf32>
    %302 = math.tanh %301 : vector<2x32xf32>
    %303 = arith.mulf %298, %302 : vector<2x32xf32>
    %304 = tpu.concatenate %279, %303 in 1 : vector<2x32xf32>, vector<2x32xf32> -> vector<2x64xf32>
    %305 = arith.truncf %304 : vector<2x64xf32> to vector<2x64xbf16>
    %cst_60 = arith.constant dense<0.000000e+00> : vector<2x256xf32>
    %306 = tpu.matmul %305, %13, %cst_60 {dimension_numbers = #tpu.dot_dimension_numbers<[1], [0], [0], [1], [0, 0, 1, 1], [], []>} : vector<2x64xbf16>, vector<64x256xbf16>, vector<2x256xf32> -> vector<2x256xf32>
    %307 = vector.extract_strided_slice %12 {offsets = [12, 0], sizes = [2, 128], strides = [1, 1]} : vector<16x128xf32> to vector<2x128xf32>
    %308 = vector.extract_strided_slice %306 {offsets = [0, 0], sizes = [2, 128], strides = [1, 1]} : vector<2x256xf32> to vector<2x128xf32>
    %309 = arith.addf %307, %308 : vector<2x128xf32>
    %310 = arith.negf %309 : vector<2x128xf32>
    %311 = math.exp %310 : vector<2x128xf32>
    %cst_61 = arith.constant 1.000000e+00 : f32
    %312 = vector.broadcast %cst_61 : f32 to vector<2x128xf32>
    %313 = arith.addf %312, %311 : vector<2x128xf32>
    %314 = arith.divf %312, %313 : vector<2x128xf32>
    %315 = vector.extract_strided_slice %314 {offsets = [0, 0], sizes = [2, 32], strides = [1, 1]} : vector<2x128xf32> to vector<2x32xf32>
    %316 = vector.extract_strided_slice %314 {offsets = [0, 32], sizes = [2, 32], strides = [1, 1]} : vector<2x128xf32> to vector<2x32xf32>
    %317 = vector.extract_strided_slice %314 {offsets = [0, 64], sizes = [2, 32], strides = [1, 1]} : vector<2x128xf32> to vector<2x32xf32>
    %cst_62 = arith.constant 2.000000e+00 : f32
    %318 = vector.broadcast %cst_62 : f32 to vector<2x32xf32>
    %319 = arith.mulf %318, %317 : vector<2x32xf32>
    %cst_63 = arith.constant 1.000000e+00 : f32
    %320 = vector.broadcast %cst_63 : f32 to vector<2x32xf32>
    %321 = arith.subf %319, %320 : vector<2x32xf32>
    %322 = vector.extract_strided_slice %314 {offsets = [0, 96], sizes = [2, 32], strides = [1, 1]} : vector<2x128xf32> to vector<2x32xf32>
    %323 = arith.mulf %316, %277 : vector<2x32xf32>
    %324 = arith.mulf %315, %321 : vector<2x32xf32>
    %325 = arith.addf %323, %324 : vector<2x32xf32>
    %326 = math.tanh %325 : vector<2x32xf32>
    %327 = arith.mulf %322, %326 : vector<2x32xf32>
    %328 = arith.truncf %327 : vector<2x32xf32> to vector<2x32xbf16>
    %cst_64 = arith.constant dense<0.000000e+00> : vector<2x128xf32>
    %329 = tpu.matmul %328, %14, %cst_64 {dimension_numbers = #tpu.dot_dimension_numbers<[1], [0], [0], [1], [0, 0, 1, 1], [], []>} : vector<2x32xbf16>, vector<32x128xbf16>, vector<2x128xf32> -> vector<2x128xf32>
    %330 = vector.broadcast %15 : vector<1x128xf32> to vector<2x128xf32>
    %331 = arith.addf %329, %330 : vector<2x128xf32>
    %332 = vector.extract_strided_slice %306 {offsets = [0, 128], sizes = [2, 128], strides = [1, 1]} : vector<2x256xf32> to vector<2x128xf32>
    %333 = arith.addf %331, %332 : vector<2x128xf32>
    %334 = arith.negf %333 : vector<2x128xf32>
    %335 = math.exp %334 : vector<2x128xf32>
    %cst_65 = arith.constant 1.000000e+00 : f32
    %336 = vector.broadcast %cst_65 : f32 to vector<2x128xf32>
    %337 = arith.addf %336, %335 : vector<2x128xf32>
    %338 = arith.divf %336, %337 : vector<2x128xf32>
    %339 = vector.extract_strided_slice %338 {offsets = [0, 0], sizes = [2, 32], strides = [1, 1]} : vector<2x128xf32> to vector<2x32xf32>
    %340 = vector.extract_strided_slice %338 {offsets = [0, 32], sizes = [2, 32], strides = [1, 1]} : vector<2x128xf32> to vector<2x32xf32>
    %341 = vector.extract_strided_slice %338 {offsets = [0, 64], sizes = [2, 32], strides = [1, 1]} : vector<2x128xf32> to vector<2x32xf32>
    %cst_66 = arith.constant 2.000000e+00 : f32
    %342 = vector.broadcast %cst_66 : f32 to vector<2x32xf32>
    %343 = arith.mulf %342, %341 : vector<2x32xf32>
    %cst_67 = arith.constant 1.000000e+00 : f32
    %344 = vector.broadcast %cst_67 : f32 to vector<2x32xf32>
    %345 = arith.subf %343, %344 : vector<2x32xf32>
    %346 = vector.extract_strided_slice %338 {offsets = [0, 96], sizes = [2, 32], strides = [1, 1]} : vector<2x128xf32> to vector<2x32xf32>
    %347 = arith.mulf %340, %301 : vector<2x32xf32>
    %348 = arith.mulf %339, %345 : vector<2x32xf32>
    %349 = arith.addf %347, %348 : vector<2x32xf32>
    %350 = math.tanh %349 : vector<2x32xf32>
    %351 = arith.mulf %346, %350 : vector<2x32xf32>
    %352 = tpu.concatenate %327, %351 in 1 : vector<2x32xf32>, vector<2x32xf32> -> vector<2x64xf32>
    %353 = arith.truncf %352 : vector<2x64xf32> to vector<2x64xbf16>
    %cst_68 = arith.constant dense<0.000000e+00> : vector<2x256xf32>
    %354 = tpu.matmul %353, %13, %cst_68 {dimension_numbers = #tpu.dot_dimension_numbers<[1], [0], [0], [1], [0, 0, 1, 1], [], []>} : vector<2x64xbf16>, vector<64x256xbf16>, vector<2x256xf32> -> vector<2x256xf32>
    %355 = vector.extract_strided_slice %12 {offsets = [14, 0], sizes = [2, 128], strides = [1, 1]} : vector<16x128xf32> to vector<2x128xf32>
    %356 = vector.extract_strided_slice %354 {offsets = [0, 0], sizes = [2, 128], strides = [1, 1]} : vector<2x256xf32> to vector<2x128xf32>
    %357 = arith.addf %355, %356 : vector<2x128xf32>
    %358 = arith.negf %357 : vector<2x128xf32>
    %359 = math.exp %358 : vector<2x128xf32>
    %cst_69 = arith.constant 1.000000e+00 : f32
    %360 = vector.broadcast %cst_69 : f32 to vector<2x128xf32>
    %361 = arith.addf %360, %359 : vector<2x128xf32>
    %362 = arith.divf %360, %361 : vector<2x128xf32>
    %363 = vector.extract_strided_slice %362 {offsets = [0, 0], sizes = [2, 32], strides = [1, 1]} : vector<2x128xf32> to vector<2x32xf32>
    %364 = vector.extract_strided_slice %362 {offsets = [0, 32], sizes = [2, 32], strides = [1, 1]} : vector<2x128xf32> to vector<2x32xf32>
    %365 = vector.extract_strided_slice %362 {offsets = [0, 64], sizes = [2, 32], strides = [1, 1]} : vector<2x128xf32> to vector<2x32xf32>
    %cst_70 = arith.constant 2.000000e+00 : f32
    %366 = vector.broadcast %cst_70 : f32 to vector<2x32xf32>
    %367 = arith.mulf %366, %365 : vector<2x32xf32>
    %cst_71 = arith.constant 1.000000e+00 : f32
    %368 = vector.broadcast %cst_71 : f32 to vector<2x32xf32>
    %369 = arith.subf %367, %368 : vector<2x32xf32>
    %370 = vector.extract_strided_slice %362 {offsets = [0, 96], sizes = [2, 32], strides = [1, 1]} : vector<2x128xf32> to vector<2x32xf32>
    %371 = arith.mulf %364, %325 : vector<2x32xf32>
    %372 = arith.mulf %363, %369 : vector<2x32xf32>
    %373 = arith.addf %371, %372 : vector<2x32xf32>
    %374 = math.tanh %373 : vector<2x32xf32>
    %375 = arith.mulf %370, %374 : vector<2x32xf32>
    %376 = arith.truncf %375 : vector<2x32xf32> to vector<2x32xbf16>
    %cst_72 = arith.constant dense<0.000000e+00> : vector<2x128xf32>
    %377 = tpu.matmul %376, %14, %cst_72 {dimension_numbers = #tpu.dot_dimension_numbers<[1], [0], [0], [1], [0, 0, 1, 1], [], []>} : vector<2x32xbf16>, vector<32x128xbf16>, vector<2x128xf32> -> vector<2x128xf32>
    %378 = vector.broadcast %15 : vector<1x128xf32> to vector<2x128xf32>
    %379 = arith.addf %377, %378 : vector<2x128xf32>
    %380 = vector.extract_strided_slice %354 {offsets = [0, 128], sizes = [2, 128], strides = [1, 1]} : vector<2x256xf32> to vector<2x128xf32>
    %381 = arith.addf %379, %380 : vector<2x128xf32>
    %382 = arith.negf %381 : vector<2x128xf32>
    %383 = math.exp %382 : vector<2x128xf32>
    %cst_73 = arith.constant 1.000000e+00 : f32
    %384 = vector.broadcast %cst_73 : f32 to vector<2x128xf32>
    %385 = arith.addf %384, %383 : vector<2x128xf32>
    %386 = arith.divf %384, %385 : vector<2x128xf32>
    %387 = vector.extract_strided_slice %386 {offsets = [0, 0], sizes = [2, 32], strides = [1, 1]} : vector<2x128xf32> to vector<2x32xf32>
    %388 = vector.extract_strided_slice %386 {offsets = [0, 32], sizes = [2, 32], strides = [1, 1]} : vector<2x128xf32> to vector<2x32xf32>
    %389 = vector.extract_strided_slice %386 {offsets = [0, 64], sizes = [2, 32], strides = [1, 1]} : vector<2x128xf32> to vector<2x32xf32>
    %cst_74 = arith.constant 2.000000e+00 : f32
    %390 = vector.broadcast %cst_74 : f32 to vector<2x32xf32>
    %391 = arith.mulf %390, %389 : vector<2x32xf32>
    %cst_75 = arith.constant 1.000000e+00 : f32
    %392 = vector.broadcast %cst_75 : f32 to vector<2x32xf32>
    %393 = arith.subf %391, %392 : vector<2x32xf32>
    %394 = vector.extract_strided_slice %386 {offsets = [0, 96], sizes = [2, 32], strides = [1, 1]} : vector<2x128xf32> to vector<2x32xf32>
    %395 = arith.mulf %388, %349 : vector<2x32xf32>
    %396 = arith.mulf %387, %393 : vector<2x32xf32>
    %397 = arith.addf %395, %396 : vector<2x32xf32>
    %398 = math.tanh %397 : vector<2x32xf32>
    %399 = arith.mulf %394, %398 : vector<2x32xf32>
    %c2 = arith.constant 2 : index
    %c0_76 = arith.constant 0 : index
    %400 = vector.load %arg3[%c2, %c0_76] : memref<7x128xf32, #tpu.memory_space<vmem>>, vector<1x128xf32>
    %401 = vector.extract_strided_slice %400 {offsets = [0, 0], sizes = [1, 32], strides = [1, 1]} : vector<1x128xf32> to vector<1x32xf32>
    %402 = vector.extract_strided_slice %400 {offsets = [0, 32], sizes = [1, 1], strides = [1, 1]} : vector<1x128xf32> to vector<1x1xf32>
    %403 = vector.broadcast %401 : vector<1x32xf32> to vector<2x32xf32>
    %404 = arith.mulf %399, %403 : vector<2x32xf32>
    %cst_77 = arith.constant dense<0.000000e+00> : vector<2xf32>
    %405 = vector.multi_reduction <add>, %404, %cst_77 [1] : vector<2x32xf32> to vector<2xf32>
    %406 = vector.shape_cast %405 : vector<2xf32> to vector<2x1xf32>
    %407 = vector.broadcast %402 : vector<1x1xf32> to vector<2x1xf32>
    %408 = arith.addf %406, %407 : vector<2x1xf32>
    %c64 = arith.constant 64 : index
    %c0_78 = arith.constant 0 : index
    %409 = vector.load %arg2[%c64, %c0_78] : memref<128x256xbf16, #tpu.memory_space<vmem>>, vector<64x256xbf16>
    %c48 = arith.constant 48 : index
    %c0_79 = arith.constant 0 : index
    %410 = vector.load %arg1[%c48, %c0_79] : memref<144x128xbf16, #tpu.memory_space<vmem>>, vector<32x128xbf16>
    %c80 = arith.constant 80 : index
    %c0_80 = arith.constant 0 : index
    %411 = vector.load %arg1[%c80, %c0_80] : memref<144x128xbf16, #tpu.memory_space<vmem>>, vector<32x128xbf16>
    %c3 = arith.constant 3 : index
    %c0_81 = arith.constant 0 : index
    %412 = vector.load %arg3[%c3, %c0_81] : memref<7x128xf32, #tpu.memory_space<vmem>>, vector<1x128xf32>
    %c4 = arith.constant 4 : index
    %c0_82 = arith.constant 0 : index
    %413 = vector.load %arg3[%c4, %c0_82] : memref<7x128xf32, #tpu.memory_space<vmem>>, vector<1x128xf32>
    %c112 = arith.constant 112 : index
    %c0_83 = arith.constant 0 : index
    %414 = vector.load %arg1[%c112, %c0_83] : memref<144x128xbf16, #tpu.memory_space<vmem>>, vector<32x128xbf16>
    %c5 = arith.constant 5 : index
    %c0_84 = arith.constant 0 : index
    %415 = vector.load %arg3[%c5, %c0_84] : memref<7x128xf32, #tpu.memory_space<vmem>>, vector<1x128xf32>
    %416 = arith.truncf %399 : vector<2x32xf32> to vector<2x32xbf16>
    %417 = tpu.concatenate %375, %399 in 1 : vector<2x32xf32>, vector<2x32xf32> -> vector<2x64xf32>
    %418 = arith.truncf %417 : vector<2x64xf32> to vector<2x64xbf16>
    %cst_85 = arith.constant dense<0.000000e+00> : vector<2x256xf32>
    %419 = tpu.matmul %418, %409, %cst_85 {dimension_numbers = #tpu.dot_dimension_numbers<[1], [0], [0], [1], [0, 0, 1, 1], [], []>} : vector<2x64xbf16>, vector<64x256xbf16>, vector<2x256xf32> -> vector<2x256xf32>
    %cst_86 = arith.constant dense<0.000000e+00> : vector<2x128xf32>
    %420 = tpu.matmul %416, %410, %cst_86 {dimension_numbers = #tpu.dot_dimension_numbers<[1], [0], [0], [1], [0, 0, 1, 1], [], []>} : vector<2x32xbf16>, vector<32x128xbf16>, vector<2x128xf32> -> vector<2x128xf32>
    %421 = vector.broadcast %412 : vector<1x128xf32> to vector<2x128xf32>
    %422 = arith.addf %420, %421 : vector<2x128xf32>
    %423 = vector.extract_strided_slice %419 {offsets = [0, 0], sizes = [2, 128], strides = [1, 1]} : vector<2x256xf32> to vector<2x128xf32>
    %424 = arith.addf %422, %423 : vector<2x128xf32>
    %425 = arith.negf %424 : vector<2x128xf32>
    %426 = math.exp %425 : vector<2x128xf32>
    %cst_87 = arith.constant 1.000000e+00 : f32
    %427 = vector.broadcast %cst_87 : f32 to vector<2x128xf32>
    %428 = arith.addf %427, %426 : vector<2x128xf32>
    %429 = arith.divf %427, %428 : vector<2x128xf32>
    %430 = vector.extract_strided_slice %429 {offsets = [0, 0], sizes = [2, 32], strides = [1, 1]} : vector<2x128xf32> to vector<2x32xf32>
    %431 = vector.extract_strided_slice %429 {offsets = [0, 32], sizes = [2, 32], strides = [1, 1]} : vector<2x128xf32> to vector<2x32xf32>
    %432 = vector.extract_strided_slice %429 {offsets = [0, 64], sizes = [2, 32], strides = [1, 1]} : vector<2x128xf32> to vector<2x32xf32>
    %cst_88 = arith.constant 2.000000e+00 : f32
    %433 = vector.broadcast %cst_88 : f32 to vector<2x32xf32>
    %434 = arith.mulf %433, %432 : vector<2x32xf32>
    %cst_89 = arith.constant 1.000000e+00 : f32
    %435 = vector.broadcast %cst_89 : f32 to vector<2x32xf32>
    %436 = arith.subf %434, %435 : vector<2x32xf32>
    %437 = vector.extract_strided_slice %429 {offsets = [0, 96], sizes = [2, 32], strides = [1, 1]} : vector<2x128xf32> to vector<2x32xf32>
    %438 = arith.mulf %431, %373 : vector<2x32xf32>
    %439 = arith.mulf %430, %436 : vector<2x32xf32>
    %440 = arith.addf %438, %439 : vector<2x32xf32>
    %441 = math.tanh %440 : vector<2x32xf32>
    %442 = arith.mulf %437, %441 : vector<2x32xf32>
    %443 = arith.truncf %442 : vector<2x32xf32> to vector<2x32xbf16>
    %cst_90 = arith.constant dense<0.000000e+00> : vector<2x128xf32>
    %444 = tpu.matmul %443, %414, %cst_90 {dimension_numbers = #tpu.dot_dimension_numbers<[1], [0], [0], [1], [0, 0, 1, 1], [], []>} : vector<2x32xbf16>, vector<32x128xbf16>, vector<2x128xf32> -> vector<2x128xf32>
    %445 = vector.broadcast %415 : vector<1x128xf32> to vector<2x128xf32>
    %446 = arith.addf %444, %445 : vector<2x128xf32>
    %447 = vector.extract_strided_slice %419 {offsets = [0, 128], sizes = [2, 128], strides = [1, 1]} : vector<2x256xf32> to vector<2x128xf32>
    %448 = arith.addf %446, %447 : vector<2x128xf32>
    %449 = arith.negf %448 : vector<2x128xf32>
    %450 = math.exp %449 : vector<2x128xf32>
    %cst_91 = arith.constant 1.000000e+00 : f32
    %451 = vector.broadcast %cst_91 : f32 to vector<2x128xf32>
    %452 = arith.addf %451, %450 : vector<2x128xf32>
    %453 = arith.divf %451, %452 : vector<2x128xf32>
    %454 = vector.extract_strided_slice %453 {offsets = [0, 0], sizes = [2, 32], strides = [1, 1]} : vector<2x128xf32> to vector<2x32xf32>
    %455 = vector.extract_strided_slice %453 {offsets = [0, 32], sizes = [2, 32], strides = [1, 1]} : vector<2x128xf32> to vector<2x32xf32>
    %456 = vector.extract_strided_slice %453 {offsets = [0, 64], sizes = [2, 32], strides = [1, 1]} : vector<2x128xf32> to vector<2x32xf32>
    %cst_92 = arith.constant 2.000000e+00 : f32
    %457 = vector.broadcast %cst_92 : f32 to vector<2x32xf32>
    %458 = arith.mulf %457, %456 : vector<2x32xf32>
    %cst_93 = arith.constant 1.000000e+00 : f32
    %459 = vector.broadcast %cst_93 : f32 to vector<2x32xf32>
    %460 = arith.subf %458, %459 : vector<2x32xf32>
    %461 = vector.extract_strided_slice %453 {offsets = [0, 96], sizes = [2, 32], strides = [1, 1]} : vector<2x128xf32> to vector<2x32xf32>
    %462 = arith.mulf %455, %397 : vector<2x32xf32>
    %463 = arith.mulf %454, %460 : vector<2x32xf32>
    %464 = arith.addf %462, %463 : vector<2x32xf32>
    %465 = math.tanh %464 : vector<2x32xf32>
    %466 = arith.mulf %461, %465 : vector<2x32xf32>
    %c6 = arith.constant 6 : index
    %c0_94 = arith.constant 0 : index
    %467 = vector.load %arg3[%c6, %c0_94] : memref<7x128xf32, #tpu.memory_space<vmem>>, vector<1x128xf32>
    %468 = vector.extract_strided_slice %467 {offsets = [0, 0], sizes = [1, 32], strides = [1, 1]} : vector<1x128xf32> to vector<1x32xf32>
    %469 = vector.extract_strided_slice %467 {offsets = [0, 32], sizes = [1, 1], strides = [1, 1]} : vector<1x128xf32> to vector<1x1xf32>
    %470 = vector.broadcast %468 : vector<1x32xf32> to vector<2x32xf32>
    %471 = arith.mulf %466, %470 : vector<2x32xf32>
    %cst_95 = arith.constant dense<0.000000e+00> : vector<2xf32>
    %472 = vector.multi_reduction <add>, %471, %cst_95 [1] : vector<2x32xf32> to vector<2xf32>
    %473 = vector.shape_cast %472 : vector<2xf32> to vector<2x1xf32>
    %474 = vector.broadcast %469 : vector<1x1xf32> to vector<2x1xf32>
    %475 = arith.addf %473, %474 : vector<2x1xf32>
    %476 = arith.truncf %466 : vector<2x32xf32> to vector<2x32xbf16>
    %477 = tpu.concatenate %442, %466 in 1 : vector<2x32xf32>, vector<2x32xf32> -> vector<2x64xf32>
    %478 = arith.truncf %477 : vector<2x64xf32> to vector<2x64xbf16>
    %cst_96 = arith.constant dense<0.000000e+00> : vector<2x256xf32>
    %479 = tpu.matmul %478, %409, %cst_96 {dimension_numbers = #tpu.dot_dimension_numbers<[1], [0], [0], [1], [0, 0, 1, 1], [], []>} : vector<2x64xbf16>, vector<64x256xbf16>, vector<2x256xf32> -> vector<2x256xf32>
    %cst_97 = arith.constant dense<0.000000e+00> : vector<2x128xf32>
    %480 = tpu.matmul %476, %411, %cst_97 {dimension_numbers = #tpu.dot_dimension_numbers<[1], [0], [0], [1], [0, 0, 1, 1], [], []>} : vector<2x32xbf16>, vector<32x128xbf16>, vector<2x128xf32> -> vector<2x128xf32>
    %481 = vector.broadcast %413 : vector<1x128xf32> to vector<2x128xf32>
    %482 = arith.addf %480, %481 : vector<2x128xf32>
    %483 = vector.extract_strided_slice %479 {offsets = [0, 0], sizes = [2, 128], strides = [1, 1]} : vector<2x256xf32> to vector<2x128xf32>
    %484 = arith.addf %482, %483 : vector<2x128xf32>
    %485 = arith.negf %484 : vector<2x128xf32>
    %486 = math.exp %485 : vector<2x128xf32>
    %cst_98 = arith.constant 1.000000e+00 : f32
    %487 = vector.broadcast %cst_98 : f32 to vector<2x128xf32>
    %488 = arith.addf %487, %486 : vector<2x128xf32>
    %489 = arith.divf %487, %488 : vector<2x128xf32>
    %490 = vector.extract_strided_slice %489 {offsets = [0, 0], sizes = [2, 32], strides = [1, 1]} : vector<2x128xf32> to vector<2x32xf32>
    %491 = vector.extract_strided_slice %489 {offsets = [0, 32], sizes = [2, 32], strides = [1, 1]} : vector<2x128xf32> to vector<2x32xf32>
    %492 = vector.extract_strided_slice %489 {offsets = [0, 64], sizes = [2, 32], strides = [1, 1]} : vector<2x128xf32> to vector<2x32xf32>
    %cst_99 = arith.constant 2.000000e+00 : f32
    %493 = vector.broadcast %cst_99 : f32 to vector<2x32xf32>
    %494 = arith.mulf %493, %492 : vector<2x32xf32>
    %cst_100 = arith.constant 1.000000e+00 : f32
    %495 = vector.broadcast %cst_100 : f32 to vector<2x32xf32>
    %496 = arith.subf %494, %495 : vector<2x32xf32>
    %497 = vector.extract_strided_slice %489 {offsets = [0, 96], sizes = [2, 32], strides = [1, 1]} : vector<2x128xf32> to vector<2x32xf32>
    %498 = arith.mulf %491, %440 : vector<2x32xf32>
    %499 = arith.mulf %490, %496 : vector<2x32xf32>
    %500 = arith.addf %498, %499 : vector<2x32xf32>
    %501 = math.tanh %500 : vector<2x32xf32>
    %502 = arith.mulf %497, %501 : vector<2x32xf32>
    %503 = arith.truncf %502 : vector<2x32xf32> to vector<2x32xbf16>
    %cst_101 = arith.constant dense<0.000000e+00> : vector<2x128xf32>
    %504 = tpu.matmul %503, %414, %cst_101 {dimension_numbers = #tpu.dot_dimension_numbers<[1], [0], [0], [1], [0, 0, 1, 1], [], []>} : vector<2x32xbf16>, vector<32x128xbf16>, vector<2x128xf32> -> vector<2x128xf32>
    %505 = vector.broadcast %415 : vector<1x128xf32> to vector<2x128xf32>
    %506 = arith.addf %504, %505 : vector<2x128xf32>
    %507 = vector.extract_strided_slice %479 {offsets = [0, 128], sizes = [2, 128], strides = [1, 1]} : vector<2x256xf32> to vector<2x128xf32>
    %508 = arith.addf %506, %507 : vector<2x128xf32>
    %509 = arith.negf %508 : vector<2x128xf32>
    %510 = math.exp %509 : vector<2x128xf32>
    %cst_102 = arith.constant 1.000000e+00 : f32
    %511 = vector.broadcast %cst_102 : f32 to vector<2x128xf32>
    %512 = arith.addf %511, %510 : vector<2x128xf32>
    %513 = arith.divf %511, %512 : vector<2x128xf32>
    %514 = vector.extract_strided_slice %513 {offsets = [0, 0], sizes = [2, 32], strides = [1, 1]} : vector<2x128xf32> to vector<2x32xf32>
    %515 = vector.extract_strided_slice %513 {offsets = [0, 32], sizes = [2, 32], strides = [1, 1]} : vector<2x128xf32> to vector<2x32xf32>
    %516 = vector.extract_strided_slice %513 {offsets = [0, 64], sizes = [2, 32], strides = [1, 1]} : vector<2x128xf32> to vector<2x32xf32>
    %cst_103 = arith.constant 2.000000e+00 : f32
    %517 = vector.broadcast %cst_103 : f32 to vector<2x32xf32>
    %518 = arith.mulf %517, %516 : vector<2x32xf32>
    %cst_104 = arith.constant 1.000000e+00 : f32
    %519 = vector.broadcast %cst_104 : f32 to vector<2x32xf32>
    %520 = arith.subf %518, %519 : vector<2x32xf32>
    %521 = vector.extract_strided_slice %513 {offsets = [0, 96], sizes = [2, 32], strides = [1, 1]} : vector<2x128xf32> to vector<2x32xf32>
    %522 = arith.mulf %515, %464 : vector<2x32xf32>
    %523 = arith.mulf %514, %520 : vector<2x32xf32>
    %524 = arith.addf %522, %523 : vector<2x32xf32>
    %525 = math.tanh %524 : vector<2x32xf32>
    %526 = arith.mulf %521, %525 : vector<2x32xf32>
    %c6_105 = arith.constant 6 : index
    %c0_106 = arith.constant 0 : index
    %527 = vector.load %arg3[%c6_105, %c0_106] : memref<7x128xf32, #tpu.memory_space<vmem>>, vector<1x128xf32>
    %528 = vector.extract_strided_slice %527 {offsets = [0, 0], sizes = [1, 32], strides = [1, 1]} : vector<1x128xf32> to vector<1x32xf32>
    %529 = vector.extract_strided_slice %527 {offsets = [0, 32], sizes = [1, 1], strides = [1, 1]} : vector<1x128xf32> to vector<1x1xf32>
    %530 = vector.broadcast %528 : vector<1x32xf32> to vector<2x32xf32>
    %531 = arith.mulf %526, %530 : vector<2x32xf32>
    %cst_107 = arith.constant dense<0.000000e+00> : vector<2xf32>
    %532 = vector.multi_reduction <add>, %531, %cst_107 [1] : vector<2x32xf32> to vector<2xf32>
    %533 = vector.shape_cast %532 : vector<2xf32> to vector<2x1xf32>
    %534 = vector.broadcast %529 : vector<1x1xf32> to vector<2x1xf32>
    %535 = arith.addf %533, %534 : vector<2x1xf32>
    %536 = arith.truncf %526 : vector<2x32xf32> to vector<2x32xbf16>
    %537 = tpu.concatenate %502, %526 in 1 : vector<2x32xf32>, vector<2x32xf32> -> vector<2x64xf32>
    %538 = arith.truncf %537 : vector<2x64xf32> to vector<2x64xbf16>
    %cst_108 = arith.constant dense<0.000000e+00> : vector<2x256xf32>
    %539 = tpu.matmul %538, %409, %cst_108 {dimension_numbers = #tpu.dot_dimension_numbers<[1], [0], [0], [1], [0, 0, 1, 1], [], []>} : vector<2x64xbf16>, vector<64x256xbf16>, vector<2x256xf32> -> vector<2x256xf32>
    %cst_109 = arith.constant dense<0.000000e+00> : vector<2x128xf32>
    %540 = tpu.matmul %536, %411, %cst_109 {dimension_numbers = #tpu.dot_dimension_numbers<[1], [0], [0], [1], [0, 0, 1, 1], [], []>} : vector<2x32xbf16>, vector<32x128xbf16>, vector<2x128xf32> -> vector<2x128xf32>
    %541 = vector.broadcast %413 : vector<1x128xf32> to vector<2x128xf32>
    %542 = arith.addf %540, %541 : vector<2x128xf32>
    %543 = vector.extract_strided_slice %539 {offsets = [0, 0], sizes = [2, 128], strides = [1, 1]} : vector<2x256xf32> to vector<2x128xf32>
    %544 = arith.addf %542, %543 : vector<2x128xf32>
    %545 = arith.negf %544 : vector<2x128xf32>
    %546 = math.exp %545 : vector<2x128xf32>
    %cst_110 = arith.constant 1.000000e+00 : f32
    %547 = vector.broadcast %cst_110 : f32 to vector<2x128xf32>
    %548 = arith.addf %547, %546 : vector<2x128xf32>
    %549 = arith.divf %547, %548 : vector<2x128xf32>
    %550 = vector.extract_strided_slice %549 {offsets = [0, 0], sizes = [2, 32], strides = [1, 1]} : vector<2x128xf32> to vector<2x32xf32>
    %551 = vector.extract_strided_slice %549 {offsets = [0, 32], sizes = [2, 32], strides = [1, 1]} : vector<2x128xf32> to vector<2x32xf32>
    %552 = vector.extract_strided_slice %549 {offsets = [0, 64], sizes = [2, 32], strides = [1, 1]} : vector<2x128xf32> to vector<2x32xf32>
    %cst_111 = arith.constant 2.000000e+00 : f32
    %553 = vector.broadcast %cst_111 : f32 to vector<2x32xf32>
    %554 = arith.mulf %553, %552 : vector<2x32xf32>
    %cst_112 = arith.constant 1.000000e+00 : f32
    %555 = vector.broadcast %cst_112 : f32 to vector<2x32xf32>
    %556 = arith.subf %554, %555 : vector<2x32xf32>
    %557 = vector.extract_strided_slice %549 {offsets = [0, 96], sizes = [2, 32], strides = [1, 1]} : vector<2x128xf32> to vector<2x32xf32>
    %558 = arith.mulf %551, %500 : vector<2x32xf32>
    %559 = arith.mulf %550, %556 : vector<2x32xf32>
    %560 = arith.addf %558, %559 : vector<2x32xf32>
    %561 = math.tanh %560 : vector<2x32xf32>
    %562 = arith.mulf %557, %561 : vector<2x32xf32>
    %563 = arith.truncf %562 : vector<2x32xf32> to vector<2x32xbf16>
    %cst_113 = arith.constant dense<0.000000e+00> : vector<2x128xf32>
    %564 = tpu.matmul %563, %414, %cst_113 {dimension_numbers = #tpu.dot_dimension_numbers<[1], [0], [0], [1], [0, 0, 1, 1], [], []>} : vector<2x32xbf16>, vector<32x128xbf16>, vector<2x128xf32> -> vector<2x128xf32>
    %565 = vector.broadcast %415 : vector<1x128xf32> to vector<2x128xf32>
    %566 = arith.addf %564, %565 : vector<2x128xf32>
    %567 = vector.extract_strided_slice %539 {offsets = [0, 128], sizes = [2, 128], strides = [1, 1]} : vector<2x256xf32> to vector<2x128xf32>
    %568 = arith.addf %566, %567 : vector<2x128xf32>
    %569 = arith.negf %568 : vector<2x128xf32>
    %570 = math.exp %569 : vector<2x128xf32>
    %cst_114 = arith.constant 1.000000e+00 : f32
    %571 = vector.broadcast %cst_114 : f32 to vector<2x128xf32>
    %572 = arith.addf %571, %570 : vector<2x128xf32>
    %573 = arith.divf %571, %572 : vector<2x128xf32>
    %574 = vector.extract_strided_slice %573 {offsets = [0, 0], sizes = [2, 32], strides = [1, 1]} : vector<2x128xf32> to vector<2x32xf32>
    %575 = vector.extract_strided_slice %573 {offsets = [0, 32], sizes = [2, 32], strides = [1, 1]} : vector<2x128xf32> to vector<2x32xf32>
    %576 = vector.extract_strided_slice %573 {offsets = [0, 64], sizes = [2, 32], strides = [1, 1]} : vector<2x128xf32> to vector<2x32xf32>
    %cst_115 = arith.constant 2.000000e+00 : f32
    %577 = vector.broadcast %cst_115 : f32 to vector<2x32xf32>
    %578 = arith.mulf %577, %576 : vector<2x32xf32>
    %cst_116 = arith.constant 1.000000e+00 : f32
    %579 = vector.broadcast %cst_116 : f32 to vector<2x32xf32>
    %580 = arith.subf %578, %579 : vector<2x32xf32>
    %581 = vector.extract_strided_slice %573 {offsets = [0, 96], sizes = [2, 32], strides = [1, 1]} : vector<2x128xf32> to vector<2x32xf32>
    %582 = arith.mulf %575, %524 : vector<2x32xf32>
    %583 = arith.mulf %574, %580 : vector<2x32xf32>
    %584 = arith.addf %582, %583 : vector<2x32xf32>
    %585 = math.tanh %584 : vector<2x32xf32>
    %586 = arith.mulf %581, %585 : vector<2x32xf32>
    %c6_117 = arith.constant 6 : index
    %c0_118 = arith.constant 0 : index
    %587 = vector.load %arg3[%c6_117, %c0_118] : memref<7x128xf32, #tpu.memory_space<vmem>>, vector<1x128xf32>
    %588 = vector.extract_strided_slice %587 {offsets = [0, 0], sizes = [1, 32], strides = [1, 1]} : vector<1x128xf32> to vector<1x32xf32>
    %589 = vector.extract_strided_slice %587 {offsets = [0, 32], sizes = [1, 1], strides = [1, 1]} : vector<1x128xf32> to vector<1x1xf32>
    %590 = vector.broadcast %588 : vector<1x32xf32> to vector<2x32xf32>
    %591 = arith.mulf %586, %590 : vector<2x32xf32>
    %cst_119 = arith.constant dense<0.000000e+00> : vector<2xf32>
    %592 = vector.multi_reduction <add>, %591, %cst_119 [1] : vector<2x32xf32> to vector<2xf32>
    %593 = vector.shape_cast %592 : vector<2xf32> to vector<2x1xf32>
    %594 = vector.broadcast %589 : vector<1x1xf32> to vector<2x1xf32>
    %595 = arith.addf %593, %594 : vector<2x1xf32>
    %596 = tpu.concatenate %408, %475, %535, %595 in 1 : vector<2x1xf32>, vector<2x1xf32>, vector<2x1xf32>, vector<2x1xf32> -> vector<2x4xf32>
    %c0_120 = arith.constant 0 : index
    %c0_121 = arith.constant 0 : index
    %597 = vector.load %arg4[%c0_120, %c0_121] : memref<2x4xf32, #tpu.memory_space<vmem>>, vector<2x4xf32>
    tpu.vector_store %arg4[%c0_120, %c0_121], %596 {strides = array<i32>} : memref<2x4xf32, #tpu.memory_space<vmem>>, vector<2x4xf32>,
    return
  }
}

</mosaic_0001>

<bundles_post_ra>
// kernel: tpu_custom_call.1
= control target key start
LH: loop header
LB: loop body
LE: loop exit
PB: predicated region body
PF: predicated region fallthrough
CT: control target
= control target key end

     0   :  { %9 = vsyncpa [#allocation3], 0  ;;  %s3355_s0 = inlined_call_operand.vmem [shape: f32[16,1], index: 0, kind: input, shape index: {}]   ;;  %s3356_s1 = inlined_call_operand.hbm [shape: bf16[144,128], index: 1, kind: input, shape index: {}]   ;;  %s3357_s2 = inlined_call_operand.hbm [shape: bf16[128,256], index: 2, kind: input, shape index: {}]   ;;  %s3358_s3 = inlined_call_operand.vmem [shape: f32[7,128], index: 3, kind: input, shape index: {}]   ;;  %s3359_s4 = inlined_call_operand.hbm [shape: f32[2,4], index: 4, kind: output, shape index: {}]  }
   0x1   :  { %10 = vsyncpa [#allocation6], 0 }
   0x2   :  { %11 = vsyncpa [#allocation4], 0  ;;  %s2747_s15 = smov [#allocation2]   ;;  %s2675_s19 = scalar_lea.hbm %s3356_s1, 1152 }
   0x3   :  { %s19_s16 = sshll.u32 %s2747_s15, 4  ;;  %p2676_p0 = scmp.ne.s32.totalorder %s3356_s1, %s2675_s19  ;;  %s20_s16 = int_to_ptr.vmem [resolvable:$true] %s19_s16 }
   0x4   :  { %p2679_p1 = scmp.lt.u32.totalorder %s2675_s19, %s3356_s1 }
   0x6   :  { %p2681_p2 = pnand %p2679_p1, %p2676_p0 }
   0x8   :  { %2684 = shalt.err (!%p2681_p2)
}
   0x9   :  { %s2685_s24 = scalar_lea.vmem %s20_s16, 1152  ;;  %p2690_p4 = scmp.lt.s32.totalorder %s20_s16, %s20_s16 }
   0xa   :  { %p2686_p3 = scmp.ne.s32.totalorder %s20_s16, %s2685_s24  ;;  %p2691_p5 = scmp.lt.s32.totalorder %s2685_s24, %s2685_s24 }
   0xc   :  { %p2692_p6 = por %p2691_p5, %p2690_p4 }
   0xe   :  { %p2693_p7 = pnand %p2692_p6, %p2686_p3 }
  0x10   :  { %2696 = shalt.err (!%p2693_p7)
}
  0x11   :  { %s2748_s25 = smov 64   ;;  %s2749_s26 = smov 4  }
  0x12   :  { %25 = dma.hbm_to_vmem [thread:$0]  %s3356_s1, 1152, %s20_s16, [#allocation3], %s2748_s25, %s2748_s25, %s2749_s26  }
  0x13   :  { %s2750_s29 = smov [#allocation5]   ;;  %s2697_s7 = scalar_lea.hbm %s3357_s2, 2048 }
  0x14   :  { %s31_s30 = sshll.u32 %s2750_s29, 4  ;;  %p2698_p8 = scmp.ne.s32.totalorder %s3357_s2, %s2697_s7  ;;  %s32_s30 = int_to_ptr.vmem [resolvable:$true] %s31_s30 }
  0x15   :  { %p2701_p9 = scmp.lt.u32.totalorder %s2697_s7, %s3357_s2 }
  0x17   :  { %p2703_p10 = pnand %p2701_p9, %p2698_p8 }
  0x19   :  { %2706 = shalt.err (!%p2703_p10)
}
  0x1a   :  { %s2707_s12 = scalar_lea.vmem %s32_s30, 2048  ;;  %p2712_p12 = scmp.lt.s32.totalorder %s32_s30, %s32_s30 }
  0x1b   :  { %p2708_p11 = scmp.ne.s32.totalorder %s32_s30, %s2707_s12  ;;  %p2713_p13 = scmp.lt.s32.totalorder %s2707_s12, %s2707_s12 }
  0x1d   :  { %p2714_p0 = por %p2713_p13, %p2712_p12 }
  0x1f   :  { %p2715_p1 = pnand %p2714_p0, %p2708_p11 }
  0x21   :  { %2718 = shalt.err (!%p2715_p1)
}
  0x22   :  { %s2751_s1 = smov 128   ;;  %s2752_s13 = smov 8  }
  0x23   :  { %37 = dma.hbm_to_vmem [thread:$0]  %s3357_s2, 2048, %s32_s30, [#allocation6], %s2751_s1, %s2751_s1, %s2752_s13  }
  0x24   :  { %2741 = dma.done.wait [#allocation3], 1152  }
  0x25   :  { %2742 = vsyncadd [#allocation3], 4294966144 }
  0x26   :  { %2743 = dma.done.wait [#allocation6], 2048  }
  0x27   :  { %2744 = vsyncadd [#allocation6], 4294965248  ;;  %v2753_v0 = vmov 0   ;;  %v2817_v1 = vld [vmem:[#allocation5 + $0x4] ss:$8 sps:$4 sm:$0xff]   ;;  %v2754_v10 = vmov 0.0|0.0   ;;  %v62_v11 = vlaneseq }
  0x28   :  { %164 = vmatprep.mubr.bf16.mxu0 %v2753_v0  ;;  %2501 = vset.pattern.permute.xlu0 %v2753_v0  ;;  %v2819_v2 = vld [vmem:[#allocation5] ss:$8 sps:$4 sm:$0xff]   ;;  %v2822_v3 = vld [vmem:[#allocation5 + $0x14] ss:$8 sps:$4 sm:$0xff]   ;;  %v2825_v4 = vld [vmem:[#allocation5 + $0x10] ss:$8 sps:$4 sm:$0xff]  }
  0x29   :  { %2502 = vset.pattern.permute.xlu1 %v2753_v0  ;;  %132 = vmatprep.subr.bf16.mxu0 %v2817_v1  ;;  %v2828_v5 = vld [vmem:[#allocation5 + $0x24] ss:$8 sps:$4 sm:$0xff]   ;;  %v2830_v6 = vld [vmem:[#allocation5 + $0x20] ss:$8 sps:$4 sm:$0xff]   ;;  %v2835_v8 = vld [vmem:[#allocation5 + $0x34] ss:$8 sps:$4 sm:$0xff]  }
  0x2a   :  { %133 = vmatpush1.bf16.msra.mxu0 %v2819_v2  ;;  %v49_v7 = vld [vmem:[%s3355_s0] sm:$0xff]  ;;  %v2839_v9 = vld [vmem:[#allocation5 + $0x30] ss:$8 sps:$4 sm:$0xff]   ;;  %v63_v12 = vshrl.u32 %v62_v11, 7  ;;  %s2755_s19 = smov 32   ;;  %v2756_v38 = vmov 0.0  }
  0x2b   :  { %134 = vmatprep.subr.bf16.mxu0 %v2822_v3  ;;  %54 = vperm.xlu0 %2501, %v49_v7   ;;  %v47_v13 = vld [vmem:[#allocation2] sm:$0x1]  ;;  %v2850_v19 = vld [vmem:[%s3358_s3] ss:$0 sm:$0xff]  ;;  %vm2757_vm0 = vmmov 0   ;;  %v2867_v39 = vld [vmem:[#allocation2 + $0x10] sm:$0xff]  }
  0x2c   :  { %v64_v14 = vsub.s32 0, %v63_v12  ;;  %v51_v15 = vunpack.c.l.bf16 %v47_v13  ;;  %v2861_v37 = vld [vmem:[#allocation2 + $0x8] sm:$0xff]   ;;  %2373 = vmatprep.subr.bf16.mxu1 %v2756_v38  ;;  %2377 = vmatprep.mubr.msk.bf16.mxu1 %vm2757_vm0, %v2756_v38  ;;  %vm219_vm1 = vcmask 261120   ;;  %vm128_vm2 = vcmask 523264   ;;  %s2758_s8 = smov 96   ;;  %s2761_s11 = smov 99  }
  0x2d   :  { %2374 = vmatpush3.bf16.msra.mxu1 %v2861_v37  ;;  %v2894_v45 = vld [vmem:[%s3358_s3 + $0x1] ss:$0 sm:$0xff]  ;;  %vm1434_vm3 = vcmask 254976   ;;  %vm2208_vm4 = vcmask 7168   ;;  %vm2210_vm5 = vcmask 15360   ;;  %s2762_s12 = smov [#allocation7]  }
  0x2e   :  { %135 = vmatpush1.bf16.msra.mxu0 %v2825_v4  ;;  %v2844_v16 = vrot.slane %v51_v15, %v64_v14  ;;  %2375 = vmatprep.subr.bf16.mxu1 %v2756_v38  ;;  %s2222_s1 = sshll.u32 %s2762_s12, 4  ;;  %vm2212_vm6 = vcmask 23552   ;;  %vm2214_vm7 = vcmask 25600   ;;  %s2223_s1 = int_to_ptr.vmem [resolvable:$true] %s2222_s1 }
  0x2f   :  { %136 = vmatprep.subr.bf16.mxu0 %v2828_v5  ;;  %s2719_s13 = scalar_lea.vmem %s2223_s1, 32  ;;  %p2724_p3 = scmp.lt.s32.totalorder %s2223_s1, %s2223_s1 }
  0x30   :  { %p2720_p2 = scmp.ne.s32.totalorder %s2223_s1, %s2719_s13  ;;  %p2725_p4 = scmp.lt.s32.totalorder %s2719_s13, %s2719_s13 }
  0x31   :  { %2376 = vmatpush3.bf16.msra.mxu1 %v2867_v39 }
  0x32   :  { %137 = vmatpush1.bf16.msra.mxu0 %v2830_v6  ;;  %302 = vmatprep.subr.bf16.mxu1 %v2817_v1  ;;  %p2726_p5 = por %p2725_p4, %p2724_p3 }
  0x33   :  { %138 = vmatprep.subr.bf16.mxu0 %v2835_v8 }
  0x34   :  { %p2727_p6 = pnand %p2726_p5, %p2720_p2 }
  0x36   :  { %139 = vmatpush1.bf16.msra.mxu0 %v2839_v9 }
  0x37   :  { %2381 = vmatprep.subr.bf16.mxu0 %v2756_v38 }
  0x39   :  { %165 = vmatmul.mubr.bf16.vlgmr.msra.gmra.mrb[0].mxu0 %v2754_v10 }
  0x3a   :  { %2382 = vmatpush3.bf16.msra.mxu0 %v2861_v37  ;;  %2385 = vmatprep.mubr.msk.bf16.mxu0 %vm2757_vm0, %v2756_v38 }
  0x3b   :  { %2383 = vmatprep.subr.bf16.mxu0 %v2756_v38 }
  0x3e   :  { %2384 = vmatpush3.bf16.msra.mxu0 %v2867_v39 }
  0x3f   :  { %465 = vmatprep.subr.bf16.mxu0 %v2817_v1 }
  0xaa   :  { %v55_v17 = vpop.permute.xlu0 %54 }
  0xab   :  { %v66_v18 = vmul.f32 %v2844_v16, %v55_v17 }
  0xad   :  { %v2853_v20 = vadd.f32 %v2850_v19, %v66_v18 }
 0x10c   :  { %v166_v21 = vpop.f32.mrb[0].mxu0 }
 0x10d   :  { %v173_v22 = vadd.f32 %v166_v21, %v2853_v20  ;;  %v168_v23 = vpop.f32.mrb[1].mxu0 }
 0x10e   :  { %v170_v24 = vpop.f32.mrb[2].mxu0 }
 0x10f   :  { %v2241_v25 = vmul.f32 -1.442695, %v173_v22  ;;  %v171_v26 = vpop.f32.mrb[3].mxu0 }
 0x111   :  { %2535 = vpow2.f32 %v2241_v25 }
 0x11b   :  { %v2536_v27 = vpop.eup %2535 }
 0x11c   :  { %v177_v28 = vadd.f32 1.0, %v2536_v27 }
 0x11e   :  { %2537 = vrcp.f32 %v177_v28 }
 0x128   :  { %v2538_v29 = vpop.eup %2537 }
 0x129   :  { %v180_v30 = vmul.f32 2.0, %v2538_v29  ;;  %v182_v34 = vmul.f32 0.0, %v2538_v29 }
 0x12b   :  { %v2242_v31 = vadd.f32 -1.0, %v180_v30 }
 0x12d   :  { %184 = vrot.lane.b32.xlu0 %v2242_v31, %s2748_s25 }
 0x19f   :  { %v185_v32 = vpop.permute.xlu0 %184 }
 0x1a0   :  { %v187_v33 = vmul.f32 %v2538_v29, %v185_v32 }
 0x1a2   :  { %189 = vrot.lane.b32.xlu1 %v187_v33, %s2755_s19 }
 0x214   :  { %v190_v35 = vpop.permute.xlu1 %189 }
 0x215   :  { %v2858_v36 = vadd.f32 %v190_v35, %v182_v34 }
 0x217   :  { %2539 = vtanh.f32 %v2858_v36  ;;  %v356_v32 = vrot.slane %v2858_v36, 6 }
 0x221   :  { %v2540_v40 = vpop.eup %2539 }
 0x222   :  { %195 = vrot.lane.b32.xlu1 %v2540_v40, %s2748_s25 }
 0x294   :  { %v196_v41 = vpop.permute.xlu1 %195 }
 0x295   :  { %v198_v42 = vmul.f32 %v2538_v29, %v196_v41 }
 0x297   :  { %v199_v43 = vpack.c.bf16 %v198_v42, %v198_v42 }
 0x299   :  { %205 = vrot.lane.b32.xlu0 %v199_v43, %s2755_s19 }
 0x30b   :  { %v206_v44 = vpop.permute.xlu0 %205 }
 0x30c   :  { %2378 = vmatmul.mubr.msk.bf16.vlgmr.msra.gmra.mrb[0].mxu1 %vm219_vm1, %v206_v44 }
 0x30d   :  { %303 = vmatpush1.bf16.msra.mxu1 %v2819_v2  ;;  %334 = vmatprep.mubr.bf16.mxu1 %v2753_v0 }
 0x30e   :  { %304 = vmatprep.subr.bf16.mxu1 %v2822_v3 }
 0x311   :  { %305 = vmatpush1.bf16.msra.mxu1 %v2825_v4 }
 0x312   :  { %306 = vmatprep.subr.bf16.mxu1 %v2828_v5 }
 0x315   :  { %307 = vmatpush1.bf16.msra.mxu1 %v2830_v6 }
 0x316   :  { %308 = vmatprep.subr.bf16.mxu1 %v2835_v8 }
 0x319   :  { %309 = vmatpush1.bf16.msra.mxu1 %v2839_v9 }
 0x31a   :  { %2389 = vmatprep.subr.bf16.mxu1 %v2756_v38 }
 0x3df   :  { %v257_v46 = vpop.f32.mrb[0].mxu1 }
 0x3e0   :  { %v258_v47 = vadd.f32 %v2894_v45, %v257_v46  ;;  %v2379_v48 = vpop.f32.mrb[1].mxu1 }
 0x3e1   :  { %v260_v49 = vpop.f32.mrb[2].mxu1 }
 0x3e2   :  { %v263_v50 = vadd.f32 %v258_v47, %v168_v23  ;;  %v2380_v51 = vpop.f32.mrb[3].mxu1 }
 0x3e4   :  { %v2247_v52 = vmul.f32 -1.442695, %v263_v50 }
 0x3e6   :  { %2541 = vpow2.f32 %v2247_v52 }
 0x3f0   :  { %v2542_v53 = vpop.eup %2541 }
 0x3f1   :  { %v267_v54 = vadd.f32 1.0, %v2542_v53 }
 0x3f3   :  { %2543 = vrcp.f32 %v267_v54 }
 0x3fd   :  { %v2544_v55 = vpop.eup %2543 }
 0x3fe   :  { %v270_v56 = vmul.f32 2.0, %v2544_v55  ;;  %v272_v60 = vmul.f32 0.0, %v2544_v55 }
 0x400   :  { %v2248_v57 = vadd.f32 -1.0, %v270_v56 }
 0x402   :  { %274 = vrot.lane.b32.xlu1 %v2248_v57, %s2748_s25 }
 0x474   :  { %v275_v58 = vpop.permute.xlu1 %274 }
 0x475   :  { %v277_v59 = vmul.f32 %v2544_v55, %v275_v58 }
 0x477   :  { %279 = vrot.lane.b32.xlu0 %v277_v59, %s2755_s19 }
 0x47b   :  { %290 = vrot.lane.b32.xlu0 %v198_v42, %s2755_s19 }
 0x4e9   :  { %v280_v61 = vpop.permute.xlu0 %279 }
 0x4ea   :  { %v2900_v62 = vadd.f32 %v280_v61, %v272_v60 }
 0x4ec   :  { %2545 = vtanh.f32 %v2900_v62 }
 0x4ed   :  { %v291_v11 = vpop.permute.xlu0 %290 }
 0x4f6   :  { %v2546_v63 = vpop.eup %2545 }
 0x4f7   :  { %285 = vrot.lane.b32.xlu1 %v2546_v63, %s2748_s25 }
 0x569   :  { %v286_v7 = vpop.permute.xlu1 %285 }
 0x56a   :  { %v288_v10 = vmul.f32 %v2544_v55, %v286_v7 }
 0x56c   :  { %294 = vrot.lane.b32.xlu1 %v288_v10, %s2748_s25 }
 0x5de   :  { %v295_v12 = vpop.permute.xlu1 %294 }
 0x5df   :  { %v297_v13 = vsel %vm219_vm1, %v291_v11, %v295_v12 }
 0x5e0   :  { %v298_v14 = vpack.c.bf16 %v297_v13, %v297_v13 }
 0x5e2   :  { %2249 = vmatmul.mubr.msk.bf16.vlgmr.msra.gmra.mrb[4].mxu1 %vm128_vm2, %v298_v14 }
 0x5e3   :  { %2390 = vmatpush3.bf16.msra.mxu1 %v2861_v37  ;;  %2393 = vmatprep.mubr.msk.bf16.mxu1 %vm2757_vm0, %v2756_v38 }
 0x5e4   :  { %2391 = vmatprep.subr.bf16.mxu1 %v2756_v38 }
 0x5e7   :  { %2392 = vmatpush3.bf16.msra.mxu1 %v2867_v39 }
 0x5e8   :  { %628 = vmatprep.subr.bf16.mxu1 %v2817_v1 }
 0x6b5   :  { %v336_v15 = vpop.f32.mrb[4].mxu1 }
 0x6b6   :  { %v344_v17 = vrot.slane %v336_v15, 6  ;;  %v338_v18 = vpop.f32.mrb[5].mxu1 }
 0x6b7   :  { %v340_v21 = vpop.f32.mrb[6].mxu1 }
 0x6b8   :  { %v346_v22 = vadd.f32 %v344_v17, %v2853_v20  ;;  %v341_v23 = vpop.f32.mrb[7].mxu1 }
 0x6ba   :  { %v2250_v24 = vmul.f32 -1.442695, %v346_v22 }
 0x6bc   :  { %2547 = vpow2.f32 %v2250_v24 }
 0x6c6   :  { %v2548_v25 = vpop.eup %2547 }
 0x6c7   :  { %v350_v26 = vadd.f32 1.0, %v2548_v25 }
 0x6c9   :  { %2549 = vrcp.f32 %v350_v26 }
 0x6d3   :  { %v2550_v27 = vpop.eup %2549 }
 0x6d4   :  { %v353_v28 = vmul.f32 2.0, %v2550_v27  ;;  %v358_v33 = vmul.f32 %v2550_v27, %v356_v32 }
 0x6d6   :  { %v2251_v29 = vadd.f32 -1.0, %v353_v28 }
 0x6d8   :  { %360 = vrot.lane.b32.xlu0 %v2251_v29, %s2748_s25 }
 0x74a   :  { %v361_v30 = vpop.permute.xlu0 %360 }
 0x74b   :  { %v363_v31 = vmul.f32 %v2550_v27, %v361_v30 }
 0x74d   :  { %365 = vrot.lane.b32.xlu1 %v363_v31, %s2755_s19 }
 0x7bf   :  { %v366_v34 = vpop.permute.xlu1 %365 }
 0x7c0   :  { %v2917_v35 = vadd.f32 %v366_v34, %v358_v33 }
 0x7c2   :  { %2551 = vtanh.f32 %v2917_v35  ;;  %v519_v34 = vrot.slane %v2917_v35, 6 }
 0x7cc   :  { %v2552_v40 = vpop.eup %2551 }
 0x7cd   :  { %371 = vrot.lane.b32.xlu0 %v2552_v40, %s2748_s25 }
 0x83f   :  { %v372_v41 = vpop.permute.xlu0 %371 }
 0x840   :  { %v374_v42 = vmul.f32 %v2550_v27, %v372_v41 }
 0x842   :  { %v375_v43 = vpack.c.bf16 %v374_v42, %v374_v42 }
 0x844   :  { %v377_v44 = vrot.slane %v375_v43, 1 }
 0x846   :  { %378 = vrot.lane.b32.xlu1 %v377_v44, %s2755_s19 }
 0x8b8   :  { %v379_v46 = vpop.permute.xlu1 %378 }
 0x8b9   :  { %2386 = vmatmul.mubr.msk.bf16.vlgmr.msra.gmra.mrb[4].mxu0 %vm219_vm1, %v379_v46 }
 0x8ba   :  { %466 = vmatpush1.bf16.msra.mxu0 %v2819_v2  ;;  %497 = vmatprep.mubr.bf16.mxu0 %v2753_v0 }
 0x8bb   :  { %467 = vmatprep.subr.bf16.mxu0 %v2822_v3 }
 0x8be   :  { %468 = vmatpush1.bf16.msra.mxu0 %v2825_v4 }
 0x8bf   :  { %469 = vmatprep.subr.bf16.mxu0 %v2828_v5 }
 0x8c2   :  { %470 = vmatpush1.bf16.msra.mxu0 %v2830_v6 }
 0x8c3   :  { %471 = vmatprep.subr.bf16.mxu0 %v2835_v8 }
 0x8c6   :  { %472 = vmatpush1.bf16.msra.mxu0 %v2839_v9 }
 0x8c7   :  { %2397 = vmatprep.subr.bf16.mxu0 %v2756_v38 }
 0x98c   :  { %v417_v36 = vpop.f32.mrb[4].mxu0 }
 0x98d   :  { %v418_v47 = vadd.f32 %v2894_v45, %v417_v36  ;;  %v2387_v48 = vpop.f32.mrb[5].mxu0 }
 0x98e   :  { %v420_v49 = vpop.f32.mrb[6].mxu0 }
 0x98f   :  { %v423_v50 = vadd.f32 %v418_v47, %v338_v18  ;;  %v2388_v51 = vpop.f32.mrb[7].mxu0 }
 0x991   :  { %v2253_v52 = vmul.f32 -1.442695, %v423_v50 }
 0x993   :  { %2553 = vpow2.f32 %v2253_v52 }
 0x99d   :  { %v2554_v53 = vpop.eup %2553 }
 0x99e   :  { %v427_v54 = vadd.f32 1.0, %v2554_v53 }
 0x9a0   :  { %2555 = vrcp.f32 %v427_v54 }
 0x9aa   :  { %v2556_v55 = vpop.eup %2555 }
 0x9ab   :  { %v430_v56 = vmul.f32 2.0, %v2556_v55  ;;  %v432_v60 = vmul.f32 %v2556_v55, %v2900_v62 }
 0x9ad   :  { %v2254_v57 = vadd.f32 -1.0, %v430_v56 }
 0x9af   :  { %434 = vrot.lane.b32.xlu0 %v2254_v57, %s2748_s25 }
 0xa21   :  { %v435_v58 = vpop.permute.xlu0 %434 }
 0xa22   :  { %v437_v59 = vmul.f32 %v2556_v55, %v435_v58 }
 0xa24   :  { %439 = vrot.lane.b32.xlu1 %v437_v59, %s2755_s19 }
 0xa28   :  { %450 = vrot.lane.b32.xlu1 %v374_v42, %s2755_s19 }
 0xa96   :  { %v440_v61 = vpop.permute.xlu1 %439 }
 0xa97   :  { %v2937_v63 = vadd.f32 %v440_v61, %v432_v60 }
 0xa99   :  { %2557 = vtanh.f32 %v2937_v63 }
 0xa9a   :  { %v451_v13 = vpop.permute.xlu1 %450 }
 0xaa3   :  { %v2558_v7 = vpop.eup %2557 }
 0xaa4   :  { %445 = vrot.lane.b32.xlu0 %v2558_v7, %s2748_s25 }
 0xb16   :  { %v446_v10 = vpop.permute.xlu0 %445 }
 0xb17   :  { %v448_v11 = vmul.f32 %v2556_v55, %v446_v10 }
 0xb19   :  { %v454_v12 = vrot.slane %v448_v11, 6 }
 0xb1b   :  { %455 = vrot.lane.b32.xlu0 %v454_v12, %s2748_s25 }
 0xb8d   :  { %v456_v14 = vpop.permute.xlu0 %455 }
 0xb8e   :  { %v458_v15 = vsel %vm219_vm1, %v451_v13, %v456_v14 }
 0xb8f   :  { %v459_v17 = vpack.c.bf16 %v458_v15, %v458_v15 }
 0xb91   :  { %v461_v18 = vrot.slane %v459_v17, 1 }
 0xb93   :  { %2255 = vmatmul.mubr.msk.bf16.vlgmr.msra.gmra.mrb[8].mxu0 %vm128_vm2, %v461_v18 }
 0xb94   :  { %2398 = vmatpush3.bf16.msra.mxu0 %v2861_v37  ;;  %2401 = vmatprep.mubr.msk.bf16.mxu0 %vm2757_vm0, %v2756_v38 }
 0xb95   :  { %2399 = vmatprep.subr.bf16.mxu0 %v2756_v38 }
 0xb98   :  { %2400 = vmatpush3.bf16.msra.mxu0 %v2867_v39 }
 0xb99   :  { %791 = vmatprep.subr.bf16.mxu0 %v2817_v1 }
 0xc66   :  { %v499_v62 = vpop.f32.mrb[8].mxu0 }
 0xc67   :  { %v507_v21 = vrot.slane %v499_v62, 4  ;;  %v501_v22 = vpop.f32.mrb[9].mxu0 }
 0xc68   :  { %v503_v23 = vpop.f32.mrb[10].mxu0 }
 0xc69   :  { %v509_v24 = vadd.f32 %v507_v21, %v2853_v20  ;;  %v504_v25 = vpop.f32.mrb[11].mxu0 }
 0xc6b   :  { %v2256_v26 = vmul.f32 -1.442695, %v509_v24 }
 0xc6d   :  { %2559 = vpow2.f32 %v2256_v26 }
 0xc77   :  { %v2560_v27 = vpop.eup %2559 }
 0xc78   :  { %v513_v28 = vadd.f32 1.0, %v2560_v27 }
 0xc7a   :  { %2561 = vrcp.f32 %v513_v28 }
 0xc84   :  { %v2562_v29 = vpop.eup %2561 }
 0xc85   :  { %v516_v30 = vmul.f32 2.0, %v2562_v29  ;;  %v521_v40 = vmul.f32 %v2562_v29, %v519_v34 }
 0xc87   :  { %v2257_v31 = vadd.f32 -1.0, %v516_v30 }
 0xc89   :  { %523 = vrot.lane.b32.xlu1 %v2257_v31, %s2748_s25 }
 0xcfb   :  { %v524_v32 = vpop.permute.xlu1 %523 }
 0xcfc   :  { %v526_v33 = vmul.f32 %v2562_v29, %v524_v32 }
 0xcfe   :  { %528 = vrot.lane.b32.xlu0 %v526_v33, %s2755_s19 }
 0xd70   :  { %v529_v41 = vpop.permute.xlu0 %528 }
 0xd71   :  { %v2954_v42 = vadd.f32 %v529_v41, %v521_v40 }
 0xd73   :  { %2563 = vtanh.f32 %v2954_v42  ;;  %v682_v41 = vrot.slane %v2954_v42, 6 }
 0xd7d   :  { %v2564_v43 = vpop.eup %2563 }
 0xd7e   :  { %534 = vrot.lane.b32.xlu1 %v2564_v43, %s2748_s25 }
 0xdf0   :  { %v535_v44 = vpop.permute.xlu1 %534 }
 0xdf1   :  { %v537_v46 = vmul.f32 %v2562_v29, %v535_v44 }
 0xdf3   :  { %v538_v36 = vpack.c.bf16 %v537_v46, %v537_v46 }
 0xdf5   :  { %v540_v47 = vrot.slane %v538_v36, 2 }
 0xdf7   :  { %541 = vrot.lane.b32.xlu0 %v540_v47, %s2755_s19 }
 0xe69   :  { %v542_v48 = vpop.permute.xlu0 %541 }
 0xe6a   :  { %2394 = vmatmul.mubr.msk.bf16.vlgmr.msra.gmra.mrb[8].mxu1 %vm219_vm1, %v542_v48 }
 0xe6b   :  { %629 = vmatpush1.bf16.msra.mxu1 %v2819_v2  ;;  %660 = vmatprep.mubr.bf16.mxu1 %v2753_v0 }
 0xe6c   :  { %630 = vmatprep.subr.bf16.mxu1 %v2822_v3 }
 0xe6f   :  { %631 = vmatpush1.bf16.msra.mxu1 %v2825_v4 }
 0xe70   :  { %632 = vmatprep.subr.bf16.mxu1 %v2828_v5 }
 0xe73   :  { %633 = vmatpush1.bf16.msra.mxu1 %v2830_v6 }
 0xe74   :  { %634 = vmatprep.subr.bf16.mxu1 %v2835_v8 }
 0xe77   :  { %635 = vmatpush1.bf16.msra.mxu1 %v2839_v9 }
 0xe78   :  { %2405 = vmatprep.subr.bf16.mxu1 %v2756_v38 }
 0xf3d   :  { %v580_v35 = vpop.f32.mrb[8].mxu1 }
 0xf3e   :  { %v581_v49 = vadd.f32 %v2894_v45, %v580_v35  ;;  %v2395_v50 = vpop.f32.mrb[9].mxu1 }
 0xf3f   :  { %v583_v51 = vpop.f32.mrb[10].mxu1 }
 0xf40   :  { %v586_v52 = vadd.f32 %v581_v49, %v501_v22  ;;  %v2396_v53 = vpop.f32.mrb[11].mxu1 }
 0xf42   :  { %v2259_v54 = vmul.f32 -1.442695, %v586_v52 }
 0xf44   :  { %2565 = vpow2.f32 %v2259_v54 }
 0xf4e   :  { %v2566_v55 = vpop.eup %2565 }
 0xf4f   :  { %v590_v56 = vadd.f32 1.0, %v2566_v55 }
 0xf51   :  { %2567 = vrcp.f32 %v590_v56 }
 0xf5b   :  { %v2568_v57 = vpop.eup %2567 }
 0xf5c   :  { %v593_v58 = vmul.f32 2.0, %v2568_v57  ;;  %v595_v7 = vmul.f32 %v2568_v57, %v2937_v63 }
 0xf5e   :  { %v2260_v59 = vadd.f32 -1.0, %v593_v58 }
 0xf60   :  { %597 = vrot.lane.b32.xlu1 %v2260_v59, %s2748_s25 }
 0xfd2   :  { %v598_v60 = vpop.permute.xlu1 %597 }
 0xfd3   :  { %v600_v61 = vmul.f32 %v2568_v57, %v598_v60 }
 0xfd5   :  { %602 = vrot.lane.b32.xlu0 %v600_v61, %s2755_s19 }
 0xfd9   :  { %613 = vrot.lane.b32.xlu0 %v537_v46, %s2755_s19 }
0x1047   :  { %v603_v10 = vpop.permute.xlu0 %602 }
0x1048   :  { %v2974_v11 = vadd.f32 %v603_v10, %v595_v7 }
0x104a   :  { %2569 = vtanh.f32 %v2974_v11 }
0x104b   :  { %v614_v17 = vpop.permute.xlu0 %613 }
0x1054   :  { %v2570_v12 = vpop.eup %2569 }
0x1055   :  { %608 = vrot.lane.b32.xlu1 %v2570_v12, %s2748_s25 }
0x10c7   :  { %v609_v13 = vpop.permute.xlu1 %608 }
0x10c8   :  { %v611_v14 = vmul.f32 %v2568_v57, %v609_v13 }
0x10ca   :  { %v617_v15 = vrot.slane %v611_v14, 4 }
0x10cc   :  { %618 = vrot.lane.b32.xlu1 %v617_v15, %s2748_s25  ;;  %v50_v15 = vld [vmem:[%s3355_s0 + $0x8] sm:$0xff] }
0x113e   :  { %v619_v18 = vpop.permute.xlu1 %618 }
0x113f   :  { %v621_v62 = vsel %vm219_vm1, %v614_v17, %v619_v18 }
0x1140   :  { %v622_v21 = vpack.c.bf16 %v621_v62, %v621_v62 }
0x1142   :  { %v624_v22 = vrot.slane %v622_v21, 2 }
0x1144   :  { %2261 = vmatmul.mubr.msk.bf16.vlgmr.msra.gmra.mrb[12].mxu1 %vm128_vm2, %v624_v22 }
0x1145   :  { %2406 = vmatpush3.bf16.msra.mxu1 %v2861_v37  ;;  %2409 = vmatprep.mubr.msk.bf16.mxu1 %vm2757_vm0, %v2756_v38 }
0x1146   :  { %2407 = vmatprep.subr.bf16.mxu1 %v2756_v38 }
0x1149   :  { %2408 = vmatpush3.bf16.msra.mxu1 %v2867_v39 }
0x114a   :  { %947 = vmatprep.subr.bf16.mxu1 %v2817_v1 }
0x1217   :  { %v662_v63 = vpop.f32.mrb[12].mxu1 }
0x1218   :  { %v670_v23 = vrot.slane %v662_v63, 2  ;;  %v664_v24 = vpop.f32.mrb[13].mxu1 }
0x1219   :  { %v666_v25 = vpop.f32.mrb[14].mxu1 }
0x121a   :  { %v672_v26 = vadd.f32 %v670_v23, %v2853_v20  ;;  %v667_v27 = vpop.f32.mrb[15].mxu1 }
0x121c   :  { %v2262_v28 = vmul.f32 -1.442695, %v672_v26 }
0x121e   :  { %2571 = vpow2.f32 %v2262_v28 }
0x1228   :  { %v2572_v29 = vpop.eup %2571 }
0x1229   :  { %v676_v30 = vadd.f32 1.0, %v2572_v29 }
0x122b   :  { %2573 = vrcp.f32 %v676_v30 }
0x1235   :  { %v2574_v31 = vpop.eup %2573 }
0x1236   :  { %v679_v32 = vmul.f32 2.0, %v2574_v31  ;;  %v684_v43 = vmul.f32 %v2574_v31, %v682_v41 }
0x1238   :  { %v2263_v33 = vadd.f32 -1.0, %v679_v32 }
0x123a   :  { %686 = vrot.lane.b32.xlu0 %v2263_v33, %s2748_s25 }
0x12ac   :  { %v687_v34 = vpop.permute.xlu0 %686 }
0x12ad   :  { %v689_v40 = vmul.f32 %v2574_v31, %v687_v34 }
0x12af   :  { %691 = vrot.lane.b32.xlu1 %v689_v40, %s2755_s19 }
0x1321   :  { %v692_v44 = vpop.permute.xlu1 %691 }
0x1322   :  { %v2991_v20 = vadd.f32 %v692_v44, %v684_v43 }
0x1324   :  { %2575 = vtanh.f32 %v2991_v20 }
0x132e   :  { %v2576_v46 = vpop.eup %2575 }
0x132f   :  { %697 = vrot.lane.b32.xlu0 %v2576_v46, %s2748_s25 }
0x13a1   :  { %v698_v36 = vpop.permute.xlu0 %697 }
0x13a2   :  { %v700_v47 = vmul.f32 %v2574_v31, %v698_v36 }
0x13a4   :  { %v701_v48 = vpack.c.bf16 %v700_v47, %v700_v47 }
0x13a6   :  { %v703_v35 = vrot.slane %v701_v48, 3 }
0x13a8   :  { %704 = vrot.lane.b32.xlu1 %v703_v35, %s2755_s19 }
0x141a   :  { %v705_v49 = vpop.permute.xlu1 %704 }
0x141b   :  { %2402 = vmatmul.mubr.msk.bf16.vlgmr.msra.gmra.mrb[12].mxu0 %vm219_vm1, %v705_v49 }
0x141c   :  { %792 = vmatpush1.bf16.msra.mxu0 %v2819_v2  ;;  %823 = vmatprep.mubr.bf16.mxu0 %v2753_v0 }
0x141d   :  { %793 = vmatprep.subr.bf16.mxu0 %v2822_v3 }
0x1420   :  { %794 = vmatpush1.bf16.msra.mxu0 %v2825_v4 }
0x1421   :  { %795 = vmatprep.subr.bf16.mxu0 %v2828_v5 }
0x1424   :  { %796 = vmatpush1.bf16.msra.mxu0 %v2830_v6 }
0x1425   :  { %797 = vmatprep.subr.bf16.mxu0 %v2835_v8 }
0x1428   :  { %798 = vmatpush1.bf16.msra.mxu0 %v2839_v9 }
0x1429   :  { %2413 = vmatprep.subr.bf16.mxu0 %v2756_v38 }
0x14ee   :  { %v743_v42 = vpop.f32.mrb[12].mxu0 }
0x14ef   :  { %v744_v50 = vadd.f32 %v2894_v45, %v743_v42  ;;  %v2403_v51 = vpop.f32.mrb[13].mxu0 }
0x14f0   :  { %v746_v52 = vpop.f32.mrb[14].mxu0 }
0x14f1   :  { %v749_v53 = vadd.f32 %v744_v50, %v664_v24  ;;  %v2404_v54 = vpop.f32.mrb[15].mxu0 }
0x14f3   :  { %v2265_v55 = vmul.f32 -1.442695, %v749_v53 }
0x14f5   :  { %2577 = vpow2.f32 %v2265_v55 }
0x14ff   :  { %v2578_v56 = vpop.eup %2577 }
0x1500   :  { %v753_v57 = vadd.f32 1.0, %v2578_v56 }
0x1502   :  { %2579 = vrcp.f32 %v753_v57 }
0x150c   :  { %v2580_v58 = vpop.eup %2579 }
0x150d   :  { %v756_v59 = vmul.f32 2.0, %v2580_v58  ;;  %v758_v10 = vmul.f32 %v2580_v58, %v2974_v11 }
0x150f   :  { %v2266_v60 = vadd.f32 -1.0, %v756_v59 }
0x1511   :  { %760 = vrot.lane.b32.xlu0 %v2266_v60, %s2748_s25 }
0x1583   :  { %v761_v61 = vpop.permute.xlu0 %760 }
0x1584   :  { %v763_v7 = vmul.f32 %v2580_v58, %v761_v61 }
0x1586   :  { %765 = vrot.lane.b32.xlu1 %v763_v7, %s2755_s19 }
0x158a   :  { %776 = vrot.lane.b32.xlu1 %v700_v47, %s2755_s19 }
0x158e   :  { %59 = vperm.xlu1 %2502, %v50_v15  }
0x15f8   :  { %v766_v12 = vpop.permute.xlu1 %765 }
0x15f9   :  { %v3011_v13 = vadd.f32 %v766_v12, %v758_v10 }
0x15fb   :  { %2581 = vtanh.f32 %v3011_v13 }
0x15fc   :  { %v777_v21 = vpop.permute.xlu1 %776 }
0x1605   :  { %v2582_v14 = vpop.eup %2581 }
0x1606   :  { %771 = vrot.lane.b32.xlu0 %v2582_v14, %s2748_s25 }
0x160d   :  { %v60_v24 = vpop.permute.xlu1 %59 }
0x160e   :  { %v67_v25 = vmul.f32 %v2844_v16, %v60_v24 }
0x1610   :  { %v3029_v26 = vadd.f32 %v2850_v19, %v67_v25  ;;  %v842_v19 = vrot.slane %v2991_v20, 6 }
0x1678   :  { %v772_v17 = vpop.permute.xlu0 %771 }
0x1679   :  { %v774_v18 = vmul.f32 %v2580_v58, %v772_v17 }
0x167b   :  { %v780_v62 = vrot.slane %v774_v18, 2 }
0x167d   :  { %781 = vrot.lane.b32.xlu0 %v780_v62, %s2748_s25 }
0x16ef   :  { %v782_v11 = vpop.permute.xlu0 %781 }
0x16f0   :  { %v784_v22 = vsel %vm219_vm1, %v777_v21, %v782_v11 }
0x16f1   :  { %v785_v63 = vpack.c.bf16 %v784_v22, %v784_v22 }
0x16f3   :  { %v787_v23 = vrot.slane %v785_v63, 3 }
0x16f5   :  { %2267 = vmatmul.mubr.msk.bf16.vlgmr.msra.gmra.mrb[16].mxu0 %vm128_vm2, %v787_v23 }
0x16f6   :  { %2414 = vmatpush3.bf16.msra.mxu0 %v2861_v37  ;;  %2417 = vmatprep.mubr.msk.bf16.mxu0 %vm2757_vm0, %v2756_v38 }
0x16f7   :  { %2415 = vmatprep.subr.bf16.mxu0 %v2756_v38 }
0x16fa   :  { %2416 = vmatpush3.bf16.msra.mxu0 %v2867_v39 }
0x16fb   :  { %1110 = vmatprep.subr.bf16.mxu0 %v2817_v1 }
0x17c8   :  { %v825_v27 = vpop.f32.mrb[16].mxu0 }
0x17c9   :  { %v832_v28 = vadd.f32 %v825_v27, %v3029_v26  ;;  %v827_v29 = vpop.f32.mrb[17].mxu0 }
0x17ca   :  { %v829_v30 = vpop.f32.mrb[18].mxu0 }
0x17cb   :  { %v2268_v31 = vmul.f32 -1.442695, %v832_v28  ;;  %v830_v32 = vpop.f32.mrb[19].mxu0 }
0x17cd   :  { %2583 = vpow2.f32 %v2268_v31 }
0x17d7   :  { %v2584_v33 = vpop.eup %2583 }
0x17d8   :  { %v836_v34 = vadd.f32 1.0, %v2584_v33 }
0x17da   :  { %2585 = vrcp.f32 %v836_v34 }
0x17e4   :  { %v2586_v40 = vpop.eup %2585 }
0x17e5   :  { %v839_v41 = vmul.f32 2.0, %v2586_v40  ;;  %v844_v46 = vmul.f32 %v2586_v40, %v842_v19 }
0x17e7   :  { %v2269_v43 = vadd.f32 -1.0, %v839_v41 }
0x17e9   :  { %846 = vrot.lane.b32.xlu0 %v2269_v43, %s2748_s25 }
0x185b   :  { %v847_v16 = vpop.permute.xlu0 %846 }
0x185c   :  { %v849_v44 = vmul.f32 %v2586_v40, %v847_v16 }
0x185e   :  { %851 = vrot.lane.b32.xlu1 %v849_v44, %s2755_s19 }
0x18d0   :  { %v852_v36 = vpop.permute.xlu1 %851 }
0x18d1   :  { %v3035_v47 = vadd.f32 %v852_v36, %v844_v46 }
0x18d3   :  { %2587 = vtanh.f32 %v3035_v47 }
0x18dd   :  { %v2588_v48 = vpop.eup %2587 }
0x18de   :  { %857 = vrot.lane.b32.xlu0 %v2588_v48, %s2748_s25 }
0x1950   :  { %v858_v35 = vpop.permute.xlu0 %857 }
0x1951   :  { %v860_v49 = vmul.f32 %v2586_v40, %v858_v35 }
0x1953   :  { %v861_v42 = vpack.c.bf16 %v860_v49, %v860_v49 }
0x1955   :  { %863 = vrot.lane.b32.xlu1 %v861_v42, %s2755_s19 }
0x19c7   :  { %v864_v50 = vpop.permute.xlu1 %863 }
0x19c8   :  { %2410 = vmatmul.mubr.msk.bf16.vlgmr.msra.gmra.mrb[16].mxu1 %vm219_vm1, %v864_v50 }
0x19c9   :  { %948 = vmatpush1.bf16.msra.mxu1 %v2819_v2  ;;  %979 = vmatprep.mubr.bf16.mxu1 %v2753_v0 }
0x19ca   :  { %949 = vmatprep.subr.bf16.mxu1 %v2822_v3 }
0x19cd   :  { %950 = vmatpush1.bf16.msra.mxu1 %v2825_v4 }
0x19ce   :  { %951 = vmatprep.subr.bf16.mxu1 %v2828_v5 }
0x19d1   :  { %952 = vmatpush1.bf16.msra.mxu1 %v2830_v6 }
0x19d2   :  { %953 = vmatprep.subr.bf16.mxu1 %v2835_v8 }
0x19d5   :  { %954 = vmatpush1.bf16.msra.mxu1 %v2839_v9 }
0x19d6   :  { %2421 = vmatprep.subr.bf16.mxu1 %v2756_v38 }
0x1a9b   :  { %v902_v20 = vpop.f32.mrb[16].mxu1 }
0x1a9c   :  { %v903_v51 = vadd.f32 %v2894_v45, %v902_v20  ;;  %v2411_v2 = vpop.f32.mrb[17].mxu1 }
0x1a9d   :  { %v905_v52 = vpop.f32.mrb[18].mxu1 }
0x1a9e   :  { %v908_v53 = vadd.f32 %v903_v51, %v827_v29  ;;  %v2412_v54 = vpop.f32.mrb[19].mxu1 }
0x1aa0   :  { %v2271_v55 = vmul.f32 -1.442695, %v908_v53 }
0x1aa2   :  { %2589 = vpow2.f32 %v2271_v55 }
0x1aac   :  { %v2590_v56 = vpop.eup %2589 }
0x1aad   :  { %v912_v57 = vadd.f32 1.0, %v2590_v56 }
0x1aaf   :  { %2591 = vrcp.f32 %v912_v57 }
0x1ab9   :  { %v2592_v58 = vpop.eup %2591 }
0x1aba   :  { %v915_v59 = vmul.f32 2.0, %v2592_v58  ;;  %v917_v10 = vmul.f32 %v2592_v58, %v3011_v13 }
0x1abc   :  { %v2272_v60 = vadd.f32 -1.0, %v915_v59 }
0x1abe   :  { %919 = vrot.lane.b32.xlu0 %v2272_v60, %s2748_s25 }
0x1b30   :  { %v920_v61 = vpop.permute.xlu0 %919 }
0x1b31   :  { %v922_v7 = vmul.f32 %v2592_v58, %v920_v61 }
0x1b33   :  { %924 = vrot.lane.b32.xlu1 %v922_v7, %s2755_s19 }
0x1b37   :  { %935 = vrot.lane.b32.xlu1 %v860_v49, %s2755_s19  ;;  %v3078_v49 = vld [vmem:[#allocation5] ss:$8 sps:$4 sm:$0xff]  }
0x1ba5   :  { %v925_v12 = vpop.permute.xlu1 %924 }
0x1ba6   :  { %v3055_v14 = vadd.f32 %v925_v12, %v917_v10 }
0x1ba8   :  { %2593 = vtanh.f32 %v3055_v14 }
0x1ba9   :  { %v936_v62 = vpop.permute.xlu1 %935 }
0x1bb2   :  { %v2594_v15 = vpop.eup %2593 }
0x1bb3   :  { %930 = vrot.lane.b32.xlu0 %v2594_v15, %s2748_s25 }
0x1c25   :  { %v931_v17 = vpop.permute.xlu0 %930 }
0x1c26   :  { %v933_v18 = vmul.f32 %v2592_v58, %v931_v17 }
0x1c28   :  { %939 = vrot.lane.b32.xlu0 %v933_v18, %s2748_s25 }
0x1c9a   :  { %v940_v21 = vpop.permute.xlu0 %939 }
0x1c9b   :  { %v942_v11 = vsel %vm219_vm1, %v936_v62, %v940_v21 }
0x1c9c   :  { %v943_v22 = vpack.c.bf16 %v942_v11, %v942_v11 }
0x1c9e   :  { %2273 = vmatmul.mubr.msk.bf16.vlgmr.msra.gmra.mrb[20].mxu1 %vm128_vm2, %v943_v22 }
0x1c9f   :  { %2422 = vmatpush3.bf16.msra.mxu1 %v2861_v37  ;;  %2425 = vmatprep.mubr.msk.bf16.mxu1 %vm2757_vm0, %v2756_v38 }
0x1ca0   :  { %2423 = vmatprep.subr.bf16.mxu1 %v2756_v38 }
0x1ca3   :  { %2424 = vmatpush3.bf16.msra.mxu1 %v2867_v39 }
0x1ca4   :  { %1273 = vmatprep.subr.bf16.mxu1 %v2817_v1  ;;  %v1001_v1 = vrot.slane %v3035_v47, 6 }
0x1d71   :  { %v981_v13 = vpop.f32.mrb[20].mxu1 }
0x1d72   :  { %v989_v63 = vrot.slane %v981_v13, 6  ;;  %v983_v23 = vpop.f32.mrb[21].mxu1 }
0x1d73   :  { %v985_v24 = vpop.f32.mrb[22].mxu1 }
0x1d74   :  { %v991_v25 = vadd.f32 %v989_v63, %v3029_v26  ;;  %v986_v27 = vpop.f32.mrb[23].mxu1 }
0x1d76   :  { %v2274_v28 = vmul.f32 -1.442695, %v991_v25 }
0x1d78   :  { %2595 = vpow2.f32 %v2274_v28 }
0x1d82   :  { %v2596_v29 = vpop.eup %2595 }
0x1d83   :  { %v995_v30 = vadd.f32 1.0, %v2596_v29 }
0x1d85   :  { %2597 = vrcp.f32 %v995_v30 }
0x1d8f   :  { %v2598_v31 = vpop.eup %2597 }
0x1d90   :  { %v998_v32 = vmul.f32 2.0, %v2598_v31  ;;  %v1003_v41 = vmul.f32 %v2598_v31, %v1001_v1 }
0x1d92   :  { %v2275_v33 = vadd.f32 -1.0, %v998_v32 }
0x1d94   :  { %1005 = vrot.lane.b32.xlu1 %v2275_v33, %s2748_s25 }
0x1e06   :  { %v1006_v34 = vpop.permute.xlu1 %1005 }
0x1e07   :  { %v1008_v40 = vmul.f32 %v2598_v31, %v1006_v34 }
0x1e09   :  { %1010 = vrot.lane.b32.xlu0 %v1008_v40, %s2755_s19 }
0x1e7b   :  { %v1011_v43 = vpop.permute.xlu0 %1010 }
0x1e7c   :  { %v3072_v16 = vadd.f32 %v1011_v43, %v1003_v41  ;;  %v2668_v41 = vld [vmem:[#allocation5 + $0x14] ss:$8 sps:$4 sm:$0xff]   ;;  %v2669_v43 = vld [vmem:[#allocation5 + $0x10] ss:$8 sps:$4 sm:$0xff]  }
0x1e7e   :  { %2599 = vtanh.f32 %v3072_v16 }
0x1e88   :  { %v2600_v44 = vpop.eup %2599 }
0x1e89   :  { %1016 = vrot.lane.b32.xlu1 %v2600_v44, %s2748_s25  ;;  %v2671_v44 = vld [vmem:[#allocation5 + $0x20] ss:$8 sps:$4 sm:$0xff]  }
0x1efb   :  { %v1017_v19 = vpop.permute.xlu1 %1016 }
0x1efc   :  { %v1019_v46 = vmul.f32 %v2598_v31, %v1017_v19  ;;  %v2672_v19 = vld [vmem:[#allocation5 + $0x34] ss:$8 sps:$4 sm:$0xff]  }
0x1efe   :  { %v1020_v36 = vpack.c.bf16 %v1019_v46, %v1019_v46 }
0x1f00   :  { %v1022_v48 = vrot.slane %v1020_v36, 1 }
0x1f02   :  { %1023 = vrot.lane.b32.xlu0 %v1022_v48, %s2755_s19 }
0x1f74   :  { %v1024_v35 = vpop.permute.xlu0 %1023 }
0x1f75   :  { %2418 = vmatmul.mubr.msk.bf16.vlgmr.msra.gmra.mrb[20].mxu0 %vm219_vm1, %v1024_v35 }
0x1f76   :  { %1111 = vmatpush1.bf16.msra.mxu0 %v3078_v49  ;;  %1142 = vmatprep.mubr.bf16.mxu0 %v2753_v0 }
0x1f77   :  { %1112 = vmatprep.subr.bf16.mxu0 %v2822_v3 }
0x1f7a   :  { %1113 = vmatpush1.bf16.msra.mxu0 %v2825_v4 }
0x1f7b   :  { %1114 = vmatprep.subr.bf16.mxu0 %v2828_v5 }
0x1f7e   :  { %1115 = vmatpush1.bf16.msra.mxu0 %v2830_v6 }
0x1f7f   :  { %1116 = vmatprep.subr.bf16.mxu0 %v2835_v8 }
0x1f82   :  { %1117 = vmatpush1.bf16.msra.mxu0 %v2839_v9 }
0x1f83   :  { %2429 = vmatprep.subr.bf16.mxu0 %v2756_v38 }
0x2048   :  { %v1062_v47 = vpop.f32.mrb[20].mxu0 }
0x2049   :  { %v1063_v42 = vadd.f32 %v2894_v45, %v1062_v47  ;;  %v2419_v50 = vpop.f32.mrb[21].mxu0 }
0x204a   :  { %v1065_v20 = vpop.f32.mrb[22].mxu0 }
0x204b   :  { %v1068_v51 = vadd.f32 %v1063_v42, %v983_v23  ;;  %v2420_v2 = vpop.f32.mrb[23].mxu0 }
0x204d   :  { %v2277_v3 = vmul.f32 -1.442695, %v1068_v51 }
0x204f   :  { %2601 = vpow2.f32 %v2277_v3 }
0x2059   :  { %v2602_v4 = vpop.eup %2601 }
0x205a   :  { %v1072_v52 = vadd.f32 1.0, %v2602_v4 }
0x205c   :  { %2603 = vrcp.f32 %v1072_v52 }
0x2066   :  { %v2604_v5 = vpop.eup %2603 }
0x2067   :  { %v1075_v6 = vmul.f32 2.0, %v2604_v5  ;;  %v1077_v54 = vmul.f32 %v2604_v5, %v3055_v14 }
0x2069   :  { %v2278_v53 = vadd.f32 -1.0, %v1075_v6 }
0x206b   :  { %1079 = vrot.lane.b32.xlu1 %v2278_v53, %s2748_s25 }
0x20dd   :  { %v1080_v8 = vpop.permute.xlu1 %1079 }
0x20de   :  { %v1082_v9 = vmul.f32 %v2604_v5, %v1080_v8 }
0x20e0   :  { %1084 = vrot.lane.b32.xlu0 %v1082_v9, %s2755_s19 }
0x20e4   :  { %1095 = vrot.lane.b32.xlu0 %v1019_v46, %s2755_s19  ;;  %v2673_v46 = vld [vmem:[#allocation5 + $0x30] ss:$8 sps:$4 sm:$0xff]  }
0x2152   :  { %v1085_v55 = vpop.permute.xlu0 %1084 }
0x2153   :  { %v3094_v56 = vadd.f32 %v1085_v55, %v1077_v54 }
0x2155   :  { %2605 = vtanh.f32 %v3094_v56 }
0x2156   :  { %v1096_v61 = vpop.permute.xlu0 %1095 }
0x215f   :  { %v2606_v57 = vpop.eup %2605 }
0x2160   :  { %1090 = vrot.lane.b32.xlu1 %v2606_v57, %s2748_s25 }
0x21d2   :  { %v1091_v58 = vpop.permute.xlu1 %1090 }
0x21d3   :  { %v1093_v59 = vmul.f32 %v2604_v5, %v1091_v58 }
0x21d5   :  { %v1099_v60 = vrot.slane %v1093_v59, 6 }
0x21d7   :  { %1100 = vrot.lane.b32.xlu1 %v1099_v60, %s2748_s25 }
0x2249   :  { %v1101_v7 = vpop.permute.xlu1 %1100 }
0x224a   :  { %v1103_v10 = vsel %vm219_vm1, %v1096_v61, %v1101_v7 }
0x224b   :  { %v1104_v12 = vpack.c.bf16 %v1103_v10, %v1103_v10 }
0x224d   :  { %v1106_v15 = vrot.slane %v1104_v12, 1 }
0x224f   :  { %2279 = vmatmul.mubr.msk.bf16.vlgmr.msra.gmra.mrb[24].mxu0 %vm128_vm2, %v1106_v15 }
0x2250   :  { %2430 = vmatpush3.bf16.msra.mxu0 %v2861_v37  ;;  %2433 = vmatprep.mubr.msk.bf16.mxu0 %vm2757_vm0, %v2756_v38 }
0x2251   :  { %2431 = vmatprep.subr.bf16.mxu0 %v2756_v38 }
0x2254   :  { %2432 = vmatpush3.bf16.msra.mxu0 %v2867_v39  ;;  %v1164_v39 = vrot.slane %v3072_v16, 6  ;;  %v2670_v16 = vld [vmem:[#allocation5 + $0x24] ss:$8 sps:$4 sm:$0xff]  }
0x2322   :  { %v1144_v14 = vpop.f32.mrb[24].mxu0 }
0x2323   :  { %v1152_v17 = vrot.slane %v1144_v14, 4  ;;  %v1146_v18 = vpop.f32.mrb[25].mxu0 }
0x2324   :  { %v1148_v62 = vpop.f32.mrb[26].mxu0 }
0x2325   :  { %v1154_v21 = vadd.f32 %v1152_v17, %v3029_v26  ;;  %v1149_v11 = vpop.f32.mrb[27].mxu0 }
0x2327   :  { %v2280_v22 = vmul.f32 -1.442695, %v1154_v21 }
0x2329   :  { %2607 = vpow2.f32 %v2280_v22 }
0x2333   :  { %v2608_v13 = vpop.eup %2607 }
0x2334   :  { %v1158_v63 = vadd.f32 1.0, %v2608_v13 }
0x2336   :  { %2609 = vrcp.f32 %v1158_v63 }
0x2340   :  { %v2610_v37 = vpop.eup %2609 }
0x2341   :  { %v1161_v23 = vmul.f32 2.0, %v2610_v37  ;;  %v1166_v28 = vmul.f32 %v2610_v37, %v1164_v39 }
0x2343   :  { %v2281_v24 = vadd.f32 -1.0, %v1161_v23 }
0x2345   :  { %1168 = vrot.lane.b32.xlu0 %v2281_v24, %s2748_s25 }
0x23b7   :  { %v1169_v25 = vpop.permute.xlu0 %1168 }
0x23b8   :  { %v1171_v27 = vmul.f32 %v2610_v37, %v1169_v25 }
0x23ba   :  { %1173 = vrot.lane.b32.xlu1 %v1171_v27, %s2755_s19 }
0x242c   :  { %v1174_v29 = vpop.permute.xlu1 %1173 }
0x242d   :  { %v3110_v30 = vadd.f32 %v1174_v29, %v1166_v28 }
0x242f   :  { %2611 = vtanh.f32 %v3110_v30 }
0x2439   :  { %v2612_v31 = vpop.eup %2611 }
0x243a   :  { %1179 = vrot.lane.b32.xlu0 %v2612_v31, %s2748_s25 }
0x24ac   :  { %v1180_v32 = vpop.permute.xlu0 %1179 }
0x24ad   :  { %v1182_v33 = vmul.f32 %v2610_v37, %v1180_v32  ;;  %v1327_v37 = vrot.slane %v3110_v30, 6  ;;  %v2674_v32 = vld [vmem:[%s3358_s3 + $0x1] ss:$0 sm:$0xff] }
0x24af   :  { %v1183_v34 = vpack.c.bf16 %v1182_v33, %v1182_v33 }
0x24b1   :  { %v1185_v40 = vrot.slane %v1183_v34, 2 }
0x24b3   :  { %1186 = vrot.lane.b32.xlu1 %v1185_v40, %s2755_s19 }
0x2525   :  { %v1187_v1 = vpop.permute.xlu1 %1186 }
0x2526   :  { %2426 = vmatmul.mubr.msk.bf16.vlgmr.msra.gmra.mrb[24].mxu1 %vm219_vm1, %v1187_v1 }
0x2527   :  { %1274 = vmatpush1.bf16.msra.mxu1 %v3078_v49  ;;  %1305 = vmatprep.mubr.bf16.mxu1 %v2753_v0 }
0x2528   :  { %1275 = vmatprep.subr.bf16.mxu1 %v2668_v41 }
0x252b   :  { %1276 = vmatpush1.bf16.msra.mxu1 %v2669_v43 }
0x252c   :  { %1277 = vmatprep.subr.bf16.mxu1 %v2670_v16 }
0x252f   :  { %1278 = vmatpush1.bf16.msra.mxu1 %v2671_v44 }
0x2530   :  { %1279 = vmatprep.subr.bf16.mxu1 %v2672_v19 }
0x2533   :  { %1280 = vmatpush1.bf16.msra.mxu1 %v2673_v46 }
0x2534   :  { %2437 = vmatprep.subr.bf16.mxu1 %v2756_v38 }
0x25f9   :  { %v1225_v36 = vpop.f32.mrb[24].mxu1 }
0x25fa   :  { %v1226_v48 = vadd.f32 %v2894_v45, %v1225_v36  ;;  %v2427_v35 = vpop.f32.mrb[25].mxu1 }
0x25fb   :  { %v1228_v49 = vpop.f32.mrb[26].mxu1 }
0x25fc   :  { %v1231_v47 = vadd.f32 %v1226_v48, %v1146_v18  ;;  %v2428_v42 = vpop.f32.mrb[27].mxu1 }
0x25fe   :  { %v2283_v50 = vmul.f32 -1.442695, %v1231_v47 }
0x2600   :  { %2613 = vpow2.f32 %v2283_v50  ;;  %v3154_v50 = vld [vmem:[#allocation5 + $0x40] ss:$8 sps:$4 sm:$0xff]  }
0x260a   :  { %v2614_v20 = vpop.eup %2613 }
0x260b   :  { %v1235_v51 = vadd.f32 1.0, %v2614_v20  ;;  %v2519_v20 = vld [vmem:[#allocation5 + $0x44] ss:$8 sps:$4 sm:$0xff]  }
0x260c   :  { %1519 = vmatprep.subr.bf16.mxu0 %v2519_v20 }
0x260d   :  { %2615 = vrcp.f32 %v1235_v51  ;;  %v3156_v51 = vld [vmem:[#allocation5 + $0x54] ss:$8 sps:$4 sm:$0xff]  }
0x2617   :  { %v2616_v2 = vpop.eup %2615 }
0x2618   :  { %v1238_v3 = vmul.f32 2.0, %v2616_v2  ;;  %v1240_v45 = vmul.f32 %v2616_v2, %v3094_v56 }
0x261a   :  { %v2284_v4 = vadd.f32 -1.0, %v1238_v3  ;;  %v3159_v3 = vld [vmem:[#allocation5 + $0x50] ss:$8 sps:$4 sm:$0xff]  }
0x261c   :  { %1242 = vrot.lane.b32.xlu0 %v2284_v4, %s2748_s25  ;;  %v2527_v4 = vld [vmem:[#allocation2 + $0x20] sm:$0xff]  }
0x268e   :  { %v1243_v52 = vpop.permute.xlu0 %1242 }
0x268f   :  { %v1245_v5 = vmul.f32 %v2616_v2, %v1243_v52  ;;  %v3163_v52 = vld [vmem:[#allocation5 + $0x64] ss:$8 sps:$4 sm:$0xff]  }
0x2691   :  { %1247 = vrot.lane.b32.xlu1 %v1245_v5, %s2755_s19  ;;  %v3166_v5 = vld [vmem:[#allocation5 + $0x60] ss:$8 sps:$4 sm:$0xff]  }
0x2695   :  { %1258 = vrot.lane.b32.xlu1 %v1182_v33, %s2755_s19 }
0x2703   :  { %v1248_v6 = vpop.permute.xlu1 %1247 }
0x2704   :  { %v3124_v53 = vadd.f32 %v1248_v6, %v1240_v45  ;;  %v3172_v6 = vld [vmem:[#allocation5 + $0x74] ss:$8 sps:$4 sm:$0xff]  }
0x2706   :  { %2617 = vtanh.f32 %v3124_v53 }
0x2707   :  { %v1259_v57 = vpop.permute.xlu1 %1258 }
0x2710   :  { %v2618_v8 = vpop.eup %2617 }
0x2711   :  { %1253 = vrot.lane.b32.xlu0 %v2618_v8, %s2748_s25 }
0x2783   :  { %v1254_v9 = vpop.permute.xlu0 %1253 }
0x2784   :  { %v1256_v54 = vmul.f32 %v2616_v2, %v1254_v9  ;;  %v2523_v2 = vld [vmem:[#allocation2 + $0x18] sm:$0xff]  }
0x2786   :  { %v1262_v55 = vrot.slane %v1256_v54, 4 }
0x2788   :  { %1263 = vrot.lane.b32.xlu0 %v1262_v55, %s2748_s25 }
0x27fa   :  { %v1264_v58 = vpop.permute.xlu0 %1263 }
0x27fb   :  { %v1266_v59 = vsel %vm219_vm1, %v1259_v57, %v1264_v58 }
0x27fc   :  { %v1267_v60 = vpack.c.bf16 %v1266_v59, %v1266_v59 }
0x27fe   :  { %v1269_v61 = vrot.slane %v1267_v60, 2 }
0x2800   :  { %2285 = vmatmul.mubr.msk.bf16.vlgmr.msra.gmra.mrb[28].mxu1 %vm128_vm2, %v1269_v61 }
0x2801   :  { %2441 = vmatprep.mubr.msk.bf16.mxu1 %vm2757_vm0, %v2756_v38  ;;  %2438 = vmatpush3.bf16.msra.mxu1 %v2523_v2 }
0x2802   :  { %2439 = vmatprep.subr.bf16.mxu1 %v2756_v38 }
0x2805   :  { %2440 = vmatpush3.bf16.msra.mxu1 %v2527_v4 }
0x2806   :  { %2445 = vmatprep.subr.bf16.mxu1 %v2756_v38 }
0x28d3   :  { %v1307_v56 = vpop.f32.mrb[28].mxu1 }
0x28d4   :  { %v1315_v7 = vrot.slane %v1307_v56, 2  ;;  %v1309_v10 = vpop.f32.mrb[29].mxu1 }
0x28d5   :  { %v1311_v12 = vpop.f32.mrb[30].mxu1 }
0x28d6   :  { %v1317_v15 = vadd.f32 %v1315_v7, %v3029_v26  ;;  %v1312_v14 = vpop.f32.mrb[31].mxu1 }
0x28d8   :  { %v2286_v17 = vmul.f32 -1.442695, %v1317_v15 }
0x28da   :  { %2619 = vpow2.f32 %v2286_v17 }
0x28e4   :  { %v2620_v18 = vpop.eup %2619 }
0x28e5   :  { %v1321_v62 = vadd.f32 1.0, %v2620_v18 }
0x28e7   :  { %2621 = vrcp.f32 %v1321_v62 }
0x28f1   :  { %v2622_v21 = vpop.eup %2621 }
0x28f2   :  { %v1324_v11 = vmul.f32 2.0, %v2622_v21  ;;  %v1329_v23 = vmul.f32 %v2622_v21, %v1327_v37 }
0x28f4   :  { %v2287_v22 = vadd.f32 -1.0, %v1324_v11 }
0x28f6   :  { %1331 = vrot.lane.b32.xlu1 %v2287_v22, %s2748_s25 }
0x2968   :  { %v1332_v13 = vpop.permute.xlu1 %1331 }
0x2969   :  { %v1334_v63 = vmul.f32 %v2622_v21, %v1332_v13 }
0x296b   :  { %1336 = vrot.lane.b32.xlu0 %v1334_v63, %s2755_s19 }
0x29dd   :  { %v1337_v24 = vpop.permute.xlu0 %1336 }
0x29de   :  { %v3137_v26 = vadd.f32 %v1337_v24, %v1329_v23 }
0x29e0   :  { %2623 = vtanh.f32 %v3137_v26 }
0x29ea   :  { %v2624_v25 = vpop.eup %2623 }
0x29eb   :  { %1342 = vrot.lane.b32.xlu1 %v2624_v25, %s2748_s25 }
0x2a5d   :  { %v1343_v27 = vpop.permute.xlu1 %1342 }
0x2a5e   :  { %v1345_v39 = vmul.f32 %v2622_v21, %v1343_v27 }
0x2a60   :  { %v1346_v28 = vpack.c.bf16 %v1345_v39, %v1345_v39 }
0x2a62   :  { %v1348_v29 = vrot.slane %v1346_v28, 3  ;;  %v1632_v28 = vrot.slane %v3137_v26, 6 }
0x2a64   :  { %1349 = vrot.lane.b32.xlu0 %v1348_v29, %s2755_s19 }
0x2ad6   :  { %v1350_v31 = vpop.permute.xlu0 %1349 }
0x2ad7   :  { %2434 = vmatmul.mubr.msk.bf16.vlgmr.msra.gmra.mrb[28].mxu0 %vm219_vm1, %v1350_v31 }
0x2ad8   :  { %1551 = vmatprep.mubr.bf16.mxu0 %v2753_v0  ;;  %1520 = vmatpush1.bf16.msra.mxu0 %v3154_v50 }
0x2ad9   :  { %1521 = vmatprep.subr.bf16.mxu0 %v3156_v51 }
0x2adc   :  { %1522 = vmatpush1.bf16.msra.mxu0 %v3159_v3 }
0x2add   :  { %1523 = vmatprep.subr.bf16.mxu0 %v3163_v52 }
0x2ae0   :  { %1524 = vmatpush1.bf16.msra.mxu0 %v3166_v5 }
0x2ae1   :  { %1525 = vmatprep.subr.bf16.mxu0 %v3172_v6 }
0x2baa   :  { %v1388_v30 = vpop.f32.mrb[28].mxu0 }
0x2bab   :  { %v1389_v33 = vadd.f32 %v2674_v32, %v1388_v30  ;;  %v2435_v34 = vpop.f32.mrb[29].mxu0  ;;  %v3207_v32 = vld [vmem:[#allocation2 + $0x38] sm:$0xff]  }
0x2bac   :  { %v1391_v40 = vpop.f32.mrb[30].mxu0 }
0x2bad   :  { %v1394_v1 = vadd.f32 %v1389_v33, %v1309_v10  ;;  %v2436_v41 = vpop.f32.mrb[31].mxu0  ;;  %v2301_v10 = vld [vmem:[%s3358_s3 + $0x3] ss:$0 sm:$0xff]  ;;  %v3210_v33 = vld [vmem:[#allocation2 + $0x40] sm:$0xff]  }
0x2baf   :  { %v2289_v43 = vmul.f32 -1.442695, %v1394_v1 }
0x2bb1   :  { %2625 = vpow2.f32 %v2289_v43  ;;  %v3223_v43 = vld [vmem:[%s3358_s3 + $0x5] ss:$0 sm:$0xff] }
0x2bbb   :  { %v2626_v16 = vpop.eup %2625 }
0x2bbc   :  { %v1398_v44 = vadd.f32 1.0, %v2626_v16 }
0x2bbe   :  { %2627 = vrcp.f32 %v1398_v44 }
0x2bc8   :  { %v2628_v19 = vpop.eup %2627 }
0x2bc9   :  { %v1401_v46 = vmul.f32 2.0, %v2628_v19  ;;  %v1403_v49 = vmul.f32 %v2628_v19, %v3124_v53  ;;  %v3174_v53 = vld [vmem:[#allocation5 + $0x70] ss:$8 sps:$4 sm:$0xff]  }
0x2bca   :  { %1526 = vmatpush1.bf16.msra.mxu0 %v3174_v53 }
0x2bcb   :  { %v2290_v36 = vadd.f32 -1.0, %v1401_v46  ;;  %1772 = vmatprep.subr.bf16.mxu0 %v2519_v20 }
0x2bcd   :  { %1405 = vrot.lane.b32.xlu1 %v2290_v36, %s2748_s25 }
0x2c3f   :  { %v1406_v48 = vpop.permute.xlu1 %1405 }
0x2c40   :  { %v1408_v35 = vmul.f32 %v2628_v19, %v1406_v48 }
0x2c42   :  { %1410 = vrot.lane.b32.xlu0 %v1408_v35, %s2755_s19 }
0x2c46   :  { %1464 = vrot.lane.b32.xlu0 %v1345_v39, %s2755_s19 }
0x2cb4   :  { %v1411_v47 = vpop.permute.xlu0 %1410 }
0x2cb5   :  { %v3151_v42 = vadd.f32 %v1411_v47, %v1403_v49 }
0x2cb7   :  { %2629 = vtanh.f32 %v3151_v42 }
0x2cb8   :  { %v1465_v57 = vpop.permute.xlu0 %1464 }
0x2cc1   :  { %v2630_v45 = vpop.eup %2629 }
0x2cc2   :  { %1416 = vrot.lane.b32.xlu1 %v2630_v45, %s2748_s25 }
0x2d34   :  { %v1417_v8 = vpop.permute.xlu1 %1416 }
0x2d35   :  { %v3178_v9 = vmul.f32 %v2628_v19, %v1417_v8 }
0x2d37   :  { %v1468_v54 = vrot.slane %v3178_v9, 2  ;;  %v1462_v55 = vpack.c.bf16 %v3178_v9, %v3178_v9 }
0x2d39   :  { %1469 = vrot.lane.b32.xlu1 %v1468_v54, %s2748_s25  ;;  %1565 = vrot.lane.b32.xlu0 %v1462_v55, %s2755_s19 }
0x2dab   :  { %v1470_v58 = vpop.permute.xlu1 %1469  ;;  %v1566_v59 = vpop.permute.xlu0 %1565 }
0x2dac   :  { %v1472_v60 = vsel %vm219_vm1, %v1465_v57, %v1470_v58  ;;  %2442 = vmatmul.mubr.msk.bf16.vlgmr.msra.gmra.mrb[32].mxu1 %vm219_vm1, %v1566_v59  ;;  %v3233_v58 = vld [vmem:[#allocation2 + $0x28] sm:$0xff]   ;;  %v3236_v59 = vld [vmem:[#allocation2 + $0x30] sm:$0xff]  }
0x2dad   :  { %v1473_v61 = vpack.c.bf16 %v1472_v60, %v1472_v60  ;;  %2449 = vmatprep.mubr.msk.bf16.mxu1 %vm2757_vm0, %v2756_v38  ;;  %2446 = vmatpush3.bf16.msra.mxu1 %v3207_v32 }
0x2dae   :  { %2447 = vmatprep.subr.bf16.mxu1 %v2756_v38 }
0x2daf   :  { %v1475_v56 = vrot.slane %v1473_v61, 3 }
0x2db1   :  { %2300 = vmatmul.mubr.msk.bf16.vlgmr.msra.gmra.mrb[32].mxu0 %vm128_vm2, %v1475_v56  ;;  %2448 = vmatpush3.bf16.msra.mxu1 %v3210_v33 }
0x2db2   :  { %1773 = vmatpush1.bf16.msra.mxu0 %v3154_v50  ;;  %1804 = vmatprep.mubr.bf16.mxu0 %v2753_v0 }
0x2db3   :  { %1774 = vmatprep.subr.bf16.mxu0 %v3156_v51  ;;  %2453 = vmatprep.subr.bf16.mxu1 %v2756_v38 }
0x2db6   :  { %1775 = vmatpush1.bf16.msra.mxu0 %v3159_v3 }
0x2db7   :  { %1776 = vmatprep.subr.bf16.mxu0 %v3163_v52 }
0x2dba   :  { %1777 = vmatpush1.bf16.msra.mxu0 %v3166_v5 }
0x2dbb   :  { %1778 = vmatprep.subr.bf16.mxu0 %v3172_v6 }
0x2dbe   :  { %1779 = vmatpush1.bf16.msra.mxu0 %v3174_v53 }
0x2dbf   :  { %1997 = vmatprep.subr.bf16.mxu0 %v2519_v20 }
0x2e7f   :  { %v1616_v7 = vpop.f32.mrb[32].mxu1 }
0x2e80   :  { %v2443_v12 = vpop.f32.mrb[33].mxu1  ;;  %v1617_v17 = vadd.f32 %v2301_v10, %v1616_v7 }
0x2e81   :  { %v1619_v15 = vpop.f32.mrb[34].mxu1 }
0x2e82   :  { %v2444_v14 = vpop.f32.mrb[35].mxu1 }
0x2e84   :  { %v1553_v18 = vpop.f32.mrb[32].mxu0 }
0x2e85   :  { %v1622_v62 = vadd.f32 %v1617_v17, %v1553_v18  ;;  %v1555_v21 = vpop.f32.mrb[33].mxu0 }
0x2e86   :  { %v1557_v11 = vpop.f32.mrb[34].mxu0 }
0x2e87   :  { %v2305_v22 = vmul.f32 -1.442695, %v1622_v62  ;;  %v1558_v13 = vpop.f32.mrb[35].mxu0 }
0x2e89   :  { %2631 = vpow2.f32 %v2305_v22 }
0x2e93   :  { %v2632_v63 = vpop.eup %2631 }
0x2e94   :  { %v1626_v37 = vadd.f32 1.0, %v2632_v63 }
0x2e96   :  { %2633 = vrcp.f32 %v1626_v37 }
0x2ea0   :  { %v2634_v23 = vpop.eup %2633 }
0x2ea1   :  { %v1629_v24 = vmul.f32 2.0, %v2634_v23  ;;  %v1634_v29 = vmul.f32 %v2634_v23, %v1632_v28 }
0x2ea3   :  { %v2306_v25 = vadd.f32 -1.0, %v1629_v24 }
0x2ea5   :  { %1636 = vrot.lane.b32.xlu1 %v2306_v25, %s2748_s25 }
0x2f17   :  { %v1637_v27 = vpop.permute.xlu1 %1636 }
0x2f18   :  { %v1639_v39 = vmul.f32 %v2634_v23, %v1637_v27 }
0x2f1a   :  { %1641 = vrot.lane.b32.xlu0 %v1639_v39, %s2755_s19 }
0x2f8c   :  { %v1642_v31 = vpop.permute.xlu0 %1641 }
0x2f8d   :  { %v3204_v30 = vadd.f32 %v1642_v31, %v1634_v29 }
0x2f8f   :  { %2635 = vtanh.f32 %v3204_v30 }
0x2f99   :  { %v2636_v34 = vpop.eup %2635 }
0x2f9a   :  { %1647 = vrot.lane.b32.xlu1 %v2636_v34, %s2748_s25 }
0x300c   :  { %v1648_v26 = vpop.permute.xlu1 %1647 }
0x300d   :  { %v1650_v40 = vmul.f32 %v2634_v23, %v1648_v26 }
0x300f   :  { %v1651_v1 = vpack.c.bf16 %v1650_v40, %v1650_v40 }
0x3011   :  { %1657 = vrot.lane.b32.xlu0 %v1651_v1, %s2755_s19 }
0x3083   :  { %v1658_v41 = vpop.permute.xlu0 %1657 }
0x3084   :  { %2450 = vmatmul.mubr.msk.bf16.vlgmr.msra.gmra.mrb[36].mxu1 %vm219_vm1, %v1658_v41 }
0x3085   :  { %2457 = vmatprep.mubr.msk.bf16.mxu1 %vm2757_vm0, %v2756_v38  ;;  %2454 = vmatpush3.bf16.msra.mxu1 %v3233_v58 }
0x3086   :  { %2455 = vmatprep.subr.bf16.mxu1 %v2756_v38 }
0x3089   :  { %2456 = vmatpush3.bf16.msra.mxu1 %v3236_v59 }
0x308a   :  { %2461 = vmatprep.subr.bf16.mxu1 %v2756_v38 }
0x3157   :  { %v1708_v16 = vpop.f32.mrb[36].mxu1 }
0x3158   :  { %v1709_v44 = vadd.f32 %v3223_v43, %v1708_v16  ;;  %v2451_v19 = vpop.f32.mrb[37].mxu1 }
0x3159   :  { %v1711_v46 = vpop.f32.mrb[38].mxu1 }
0x315a   :  { %v1714_v36 = vadd.f32 %v1709_v44, %v1555_v21  ;;  %v2452_v48 = vpop.f32.mrb[39].mxu1 }
0x315c   :  { %v2311_v35 = vmul.f32 -1.442695, %v1714_v36 }
0x315e   :  { %2637 = vpow2.f32 %v2311_v35 }
0x3168   :  { %v2638_v49 = vpop.eup %2637 }
0x3169   :  { %v1718_v47 = vadd.f32 1.0, %v2638_v49 }
0x316b   :  { %2639 = vrcp.f32 %v1718_v47 }
0x3175   :  { %v2640_v20 = vpop.eup %2639 }
0x3176   :  { %v1721_v2 = vmul.f32 2.0, %v2640_v20  ;;  %v1723_v54 = vmul.f32 %v2640_v20, %v3151_v42 }
0x3178   :  { %v2312_v4 = vadd.f32 -1.0, %v1721_v2 }
0x317a   :  { %1725 = vrot.lane.b32.xlu1 %v2312_v4, %s2748_s25 }
0x31ec   :  { %v1726_v45 = vpop.permute.xlu1 %1725 }
0x31ed   :  { %v1728_v8 = vmul.f32 %v2640_v20, %v1726_v45 }
0x31ef   :  { %1730 = vrot.lane.b32.xlu0 %v1728_v8, %s2755_s19 }
0x31f3   :  { %1760 = vrot.lane.b32.xlu0 %v1650_v40, %s2755_s19 }
0x3261   :  { %v1731_v55 = vpop.permute.xlu0 %1730 }
0x3262   :  { %v3230_v57 = vadd.f32 %v1731_v55, %v1723_v54 }
0x3264   :  { %2641 = vtanh.f32 %v3230_v57 }
0x3265   :  { %v1761_v7 = vpop.permute.xlu0 %1760 }
0x326e   :  { %v2642_v60 = vpop.eup %2641 }
0x326f   :  { %1736 = vrot.lane.b32.xlu1 %v2642_v60, %s2748_s25 }
0x32e1   :  { %v1737_v42 = vpop.permute.xlu1 %1736 }
0x32e2   :  { %v3242_v61 = vmul.f32 %v2640_v20, %v1737_v42 }
0x32e4   :  { %1764 = vrot.lane.b32.xlu1 %v3242_v61, %s2748_s25  ;;  %v1758_v56 = vpack.c.bf16 %v3242_v61, %v3242_v61 }
0x32e6   :  { %1818 = vrot.lane.b32.xlu0 %v1758_v56, %s2755_s19 }
0x3356   :  { %v1765_v10 = vpop.permute.xlu1 %1764 }
0x3357   :  { %v1767_v12 = vsel %vm219_vm1, %v1761_v7, %v1765_v10 }
0x3358   :  { %v1768_v15 = vpack.c.bf16 %v1767_v12, %v1767_v12  ;;  %v1819_v14 = vpop.permute.xlu0 %1818 }
0x3359   :  { %2458 = vmatmul.mubr.msk.bf16.vlgmr.msra.gmra.mrb[40].mxu1 %vm219_vm1, %v1819_v14 }
0x335a   :  { %2314 = vmatmul.mubr.msk.bf16.vlgmr.msra.gmra.mrb[36].mxu0 %vm128_vm2, %v1768_v15  ;;  %2462 = vmatpush3.bf16.msra.mxu1 %v3207_v32 }
0x335b   :  { %2463 = vmatprep.subr.bf16.mxu1 %v2756_v38  ;;  %2465 = vmatprep.mubr.msk.bf16.mxu1 %vm2757_vm0, %v2756_v38 }
0x335c   :  { %1998 = vmatpush1.bf16.msra.mxu0 %v3154_v50  ;;  %2029 = vmatprep.mubr.bf16.mxu0 %v2753_v0  ;;  %v3269_v0 = vld [vmem:[%s3358_s3 + $0x4] ss:$0 sm:$0xff] }
0x335d   :  { %1999 = vmatprep.subr.bf16.mxu0 %v3156_v51 }
0x335e   :  { %2464 = vmatpush3.bf16.msra.mxu1 %v3210_v33 }
0x335f   :  { %2469 = vmatprep.subr.bf16.mxu1 %v2756_v38 }
0x3360   :  { %2000 = vmatpush1.bf16.msra.mxu0 %v3159_v3 }
0x3361   :  { %2001 = vmatprep.subr.bf16.mxu0 %v3163_v52 }
0x3364   :  { %2002 = vmatpush1.bf16.msra.mxu0 %v3166_v5 }
0x3365   :  { %2003 = vmatprep.subr.bf16.mxu0 %v3172_v6 }
0x3368   :  { %2004 = vmatpush1.bf16.msra.mxu0 %v3174_v53 }
0x342c   :  { %v1869_v50 = vpop.f32.mrb[40].mxu1 }
0x342d   :  { %v1870_v51 = vadd.f32 %v3269_v0, %v1869_v50  ;;  %v1806_v17 = vpop.f32.mrb[36].mxu0  ;;  %v2459_v18 = vpop.f32.mrb[41].mxu1 }
0x342e   :  { %v1808_v62 = vpop.f32.mrb[37].mxu0  ;;  %v1872_v3 = vpop.f32.mrb[42].mxu1 }
0x342f   :  { %v1875_v21 = vadd.f32 %v1870_v51, %v1806_v17  ;;  %v1810_v52 = vpop.f32.mrb[38].mxu0  ;;  %v2460_v11 = vpop.f32.mrb[43].mxu1 }
0x3430   :  { %v1811_v5 = vpop.f32.mrb[39].mxu0 }
0x3431   :  { %v2319_v22 = vmul.f32 -1.442695, %v1875_v21 }
0x3433   :  { %2643 = vpow2.f32 %v2319_v22 }
0x343d   :  { %v2644_v6 = vpop.eup %2643 }
0x343e   :  { %v1879_v53 = vadd.f32 1.0, %v2644_v6 }
0x3440   :  { %2645 = vrcp.f32 %v1879_v53 }
0x344a   :  { %v2646_v13 = vpop.eup %2645 }
0x344b   :  { %v1882_v63 = vmul.f32 2.0, %v2646_v13  ;;  %v1884_v25 = vmul.f32 %v2646_v13, %v3204_v30 }
0x344d   :  { %v2320_v37 = vadd.f32 -1.0, %v1882_v63 }
0x344f   :  { %1886 = vrot.lane.b32.xlu1 %v2320_v37, %s2748_s25 }
0x34c1   :  { %v1887_v23 = vpop.permute.xlu1 %1886 }
0x34c2   :  { %v1889_v24 = vmul.f32 %v2646_v13, %v1887_v23 }
0x34c4   :  { %1891 = vrot.lane.b32.xlu0 %v1889_v24, %s2755_s19 }
0x3536   :  { %v1892_v27 = vpop.permute.xlu0 %1891 }
0x3537   :  { %v3275_v39 = vadd.f32 %v1892_v27, %v1884_v25 }
0x3539   :  { %2647 = vtanh.f32 %v3275_v39 }
0x3543   :  { %v2648_v28 = vpop.eup %2647 }
0x3544   :  { %1897 = vrot.lane.b32.xlu1 %v2648_v28, %s2748_s25 }
0x35b6   :  { %v1898_v29 = vpop.permute.xlu1 %1897 }
0x35b7   :  { %v1900_v31 = vmul.f32 %v2646_v13, %v1898_v29 }
0x35b9   :  { %v1901_v34 = vpack.c.bf16 %v1900_v31, %v1900_v31 }
0x35bb   :  { %1903 = vrot.lane.b32.xlu0 %v1901_v34, %s2755_s19 }
0x362d   :  { %v1904_v26 = vpop.permute.xlu0 %1903 }
0x362e   :  { %2466 = vmatmul.mubr.msk.bf16.vlgmr.msra.gmra.mrb[44].mxu1 %vm219_vm1, %v1904_v26 }
0x362f   :  { %2470 = vmatpush3.bf16.msra.mxu1 %v3233_v58  ;;  %2473 = vmatprep.mubr.msk.bf16.mxu1 %vm2757_vm0, %v2756_v38 }
0x3630   :  { %2471 = vmatprep.subr.bf16.mxu1 %v2756_v38 }
0x3633   :  { %2472 = vmatpush3.bf16.msra.mxu1 %v3236_v59 }
0x3634   :  { %2477 = vmatprep.subr.bf16.mxu1 %v2756_v38 }
0x3701   :  { %v1942_v30 = vpop.f32.mrb[44].mxu1 }
0x3702   :  { %v1943_v40 = vadd.f32 %v3223_v43, %v1942_v30  ;;  %v2467_v1 = vpop.f32.mrb[45].mxu1 }
0x3703   :  { %v1945_v41 = vpop.f32.mrb[46].mxu1 }
0x3704   :  { %v1948_v16 = vadd.f32 %v1943_v40, %v1808_v62  ;;  %v2468_v44 = vpop.f32.mrb[47].mxu1  ;;  %v2291_v41 = vld [vmem:[%s3358_s3 + $0x2] ss:$0 sm:$0xff] }
0x3705   :  { %v2313_v44 = vld [vmem:[%s3358_s3 + $0x6] ss:$0 sm:$0xff]  ;;  %s2759_s3 = smov 98  }
0x3706   :  { %v2322_v19 = vmul.f32 -1.442695, %v1948_v16 }
0x3708   :  { %2649 = vpow2.f32 %v2322_v19 }
0x3712   :  { %v2650_v46 = vpop.eup %2649 }
0x3713   :  { %v1952_v36 = vadd.f32 1.0, %v2650_v46 }
0x3715   :  { %2651 = vrcp.f32 %v1952_v36 }
0x371f   :  { %v2652_v48 = vpop.eup %2651 }
0x3720   :  { %v1955_v35 = vmul.f32 2.0, %v2652_v48  ;;  %v1957_v2 = vmul.f32 %v2652_v48, %v3230_v57 }
0x3722   :  { %v2323_v49 = vadd.f32 -1.0, %v1955_v35 }
0x3724   :  { %1959 = vrot.lane.b32.xlu1 %v2323_v49, %s2748_s25 }
0x3796   :  { %v1960_v47 = vpop.permute.xlu1 %1959 }
0x3797   :  { %v1962_v20 = vmul.f32 %v2652_v48, %v1960_v47 }
0x3799   :  { %1964 = vrot.lane.b32.xlu0 %v1962_v20, %s2755_s19 }
0x379d   :  { %1985 = vrot.lane.b32.xlu0 %v1900_v31, %s2755_s19 }
0x380b   :  { %v1965_v4 = vpop.permute.xlu0 %1964 }
0x380c   :  { %v3292_v45 = vadd.f32 %v1965_v4, %v1957_v2 }
0x380e   :  { %2653 = vtanh.f32 %v3292_v45 }
0x380f   :  { %v1986_v57 = vpop.permute.xlu0 %1985 }
0x3818   :  { %v2654_v8 = vpop.eup %2653 }
0x3819   :  { %1970 = vrot.lane.b32.xlu1 %v2654_v8, %s2748_s25 }
0x388b   :  { %v1971_v54 = vpop.permute.xlu1 %1970 }
0x388c   :  { %v3296_v55 = vmul.f32 %v2652_v48, %v1971_v54 }
0x388e   :  { %1989 = vrot.lane.b32.xlu1 %v3296_v55, %s2748_s25  ;;  %v1983_v58 = vpack.c.bf16 %v3296_v55, %v3296_v55 }
0x3890   :  { %2039 = vrot.lane.b32.xlu0 %v1983_v58, %s2755_s19 }
0x3900   :  { %v1990_v59 = vpop.permute.xlu1 %1989 }
0x3901   :  { %v1992_v60 = vsel %vm219_vm1, %v1986_v57, %v1990_v59 }
0x3902   :  { %v1993_v42 = vpack.c.bf16 %v1992_v60, %v1992_v60  ;;  %v2040_v56 = vpop.permute.xlu0 %2039 }
0x3903   :  { %2474 = vmatmul.mubr.msk.bf16.vlgmr.msra.gmra.mrb[48].mxu1 %vm219_vm1, %v2040_v56 }
0x3904   :  { %2324 = vmatmul.mubr.msk.bf16.vlgmr.msra.gmra.mrb[40].mxu0 %vm128_vm2, %v1993_v42  ;;  %2478 = vmatpush3.bf16.msra.mxu1 %v3207_v32 }
0x3905   :  { %2479 = vmatprep.subr.bf16.mxu1 %v2756_v38  ;;  %2481 = vmatprep.mubr.msk.bf16.mxu1 %vm2757_vm0, %v2756_v38 }
0x3908   :  { %2480 = vmatpush3.bf16.msra.mxu1 %v3210_v33 }
0x39d6   :  { %v2078_v7 = vpop.f32.mrb[48].mxu1 }
0x39d7   :  { %v2079_v10 = vadd.f32 %v3269_v0, %v2078_v7  ;;  %v2031_v12 = vpop.f32.mrb[40].mxu0  ;;  %v2475_v15 = vpop.f32.mrb[49].mxu1 }
0x39d8   :  { %v2033_v14 = vpop.f32.mrb[41].mxu0  ;;  %v2081_v50 = vpop.f32.mrb[50].mxu1 }
0x39d9   :  { %v2084_v51 = vadd.f32 %v2079_v10, %v2031_v12  ;;  %v2035_v17 = vpop.f32.mrb[42].mxu0  ;;  %v2476_v18 = vpop.f32.mrb[51].mxu1 }
0x39da   :  { %v2036_v62 = vpop.f32.mrb[43].mxu0 }
0x39db   :  { %v2326_v3 = vmul.f32 -1.442695, %v2084_v51 }
0x39dd   :  { %2655 = vpow2.f32 %v2326_v3 }
0x39e7   :  { %v2656_v32 = vpop.eup %2655 }
0x39e8   :  { %v2088_v21 = vadd.f32 1.0, %v2656_v32 }
0x39ea   :  { %2657 = vrcp.f32 %v2088_v21 }
0x39f4   :  { %v2658_v52 = vpop.eup %2657 }
0x39f5   :  { %v2091_v38 = vmul.f32 2.0, %v2658_v52  ;;  %v2093_v5 = vmul.f32 %v2658_v52, %v3275_v39 }
0x39f7   :  { %v2327_v11 = vadd.f32 -1.0, %v2091_v38 }
0x39f9   :  { %2095 = vrot.lane.b32.xlu1 %v2327_v11, %s2748_s25 }
0x3a6b   :  { %v2096_v33 = vpop.permute.xlu1 %2095 }
0x3a6c   :  { %v2098_v0 = vmul.f32 %v2658_v52, %v2096_v33 }
0x3a6e   :  { %2100 = vrot.lane.b32.xlu0 %v2098_v0, %s2755_s19 }
0x3ae0   :  { %v2101_v22 = vpop.permute.xlu0 %2100 }
0x3ae1   :  { %v2103_v6 = vadd.f32 %v2101_v22, %v2093_v5 }
0x3ae3   :  { %2659 = vtanh.f32 %v2103_v6 }
0x3aed   :  { %v2660_v53 = vpop.eup %2659 }
0x3aee   :  { %2106 = vrot.lane.b32.xlu1 %v2660_v53, %s2748_s25 }
0x3b60   :  { %v2107_v13 = vpop.permute.xlu1 %2106 }
0x3b61   :  { %v2109_v63 = vmul.f32 %v2658_v52, %v2107_v13 }
0x3b63   :  { %v2110_v37 = vpack.c.bf16 %v2109_v63, %v2109_v63 }
0x3b65   :  { %2112 = vrot.lane.b32.xlu0 %v2110_v37, %s2755_s19 }
0x3bd7   :  { %v2113_v23 = vpop.permute.xlu0 %2112 }
0x3bd8   :  { %2482 = vmatmul.mubr.msk.bf16.vlgmr.msra.gmra.mrb[52].mxu1 %vm219_vm1, %v2113_v23 }
0x3cab   :  { %v2151_v24 = vpop.f32.mrb[52].mxu1 }
0x3cac   :  { %v2152_v25 = vadd.f32 %v3223_v43, %v2151_v24  ;;  %v2483_v27 = vpop.f32.mrb[53].mxu1 }
0x3cad   :  { %v2154_v28 = vpop.f32.mrb[54].mxu1 }
0x3cae   :  { %v2157_v39 = vadd.f32 %v2152_v25, %v2033_v14  ;;  %v2484_v29 = vpop.f32.mrb[55].mxu1 }
0x3cb0   :  { %v2329_v31 = vmul.f32 -1.442695, %v2157_v39 }
0x3cb2   :  { %2661 = vpow2.f32 %v2329_v31 }
0x3cbc   :  { %v2662_v34 = vpop.eup %2661 }
0x3cbd   :  { %v2161_v26 = vadd.f32 1.0, %v2662_v34 }
0x3cbf   :  { %2663 = vrcp.f32 %v2161_v26 }
0x3cc9   :  { %v2664_v30 = vpop.eup %2663 }
0x3cca   :  { %v2164_v40 = vmul.f32 2.0, %v2664_v30  ;;  %v2166_v36 = vmul.f32 %v2664_v30, %v3292_v45 }
0x3ccc   :  { %v2330_v1 = vadd.f32 -1.0, %v2164_v40 }
0x3cce   :  { %2168 = vrot.lane.b32.xlu1 %v2330_v1, %s2748_s25 }
0x3cd2   :  { %1426 = vrot.lane.b32.xlu1 %v2291_v41, %s2758_s8 }
0x3d40   :  { %v2169_v43 = vpop.permute.xlu1 %2168 }
0x3d41   :  { %v2171_v16 = vmul.f32 %v2664_v30, %v2169_v43 }
0x3d43   :  { %2173 = vrot.lane.b32.xlu0 %v2171_v16, %s2755_s19 }
0x3d44   :  { %v1427_v19 = vpop.permute.xlu1 %1426 }
0x3d45   :  { %v1429_v46 = vmul.f32 %v1427_v19, %v3178_v9 }
0x3d47   :  { %1746 = vrot.lane.b32.xlu0 %v2313_v44, %s2758_s8 }
0x3d4b   :  { %1431 = vrot.lane.b32.xlu0 %v1429_v46, %s2755_s19 }
0x3db5   :  { %v2174_v48 = vpop.permute.xlu0 %2173 }
0x3db6   :  { %v2176_v35 = vadd.f32 %v2174_v48, %v2166_v36 }
0x3db8   :  { %2665 = vtanh.f32 %v2176_v35 }
0x3db9   :  { %v1747_v49 = vpop.permute.xlu0 %1746 }
0x3dba   :  { %v1974_v47 = vmul.f32 %v3296_v55, %v1747_v49  ;;  %v1749_v2 = vmul.f32 %v1747_v49, %v3242_v61 }
0x3dbc   :  { %1976 = vrot.lane.b32.xlu0 %v1974_v47, %s2755_s19 }
0x3dbd   :  { %v1432_v9 = vpop.permute.xlu0 %1431 }
0x3dbe   :  { %v1435_v4 = vsel %vm1434_vm3, %v1432_v9, 0.0 }
0x3dc2   :  { %v2666_v20 = vpop.eup %2665 }
0x3dc3   :  { %2179 = vrot.lane.b32.xlu1 %v2666_v20, %s2748_s25  ;;  %s2760_s25 = smov 97  }
0x3dc7   :  { %1751 = vrot.lane.b32.xlu1 %v1749_v2, %s2755_s19 }
0x3ddb   :  { %1436 = vadd.xlane.f32.xlu0 %v1435_v4 }
0x3e2e   :  { %v1977_v45 = vpop.permute.xlu0 %1976 }
0x3e2f   :  { %v1979_v8 = vsel %vm1434_vm3, %v1977_v45, 0.0 }
0x3e30   :  { %1980 = vadd.xlane.f32.xlu0 %v1979_v8 }
0x3e35   :  { %v2180_v54 = vpop.permute.xlu1 %2179 }
0x3e36   :  { %v2182_v55 = vmul.f32 %v2664_v30, %v2180_v54 }
0x3e38   :  { %v2183_v58 = vmul.f32 %v2182_v55, %v1747_v49 }
0x3e39   :  { %v1752_v57 = vpop.permute.xlu1 %1751 }
0x3e3a   :  { %2185 = vrot.lane.b32.xlu1 %v2183_v58, %s2755_s19  ;;  %v1754_v59 = vsel %vm1434_vm3, %v1752_v57, 0.0 }
0x3e5e   :  { %1755 = vadd.xlane.f32.xlu1 %v1754_v59 }
0x3e68   :  { %v1437_v61 = vpop.xlane.xlu0 %1436 }
0x3e69   :  { %v1438_v60 = vadd.f32 %v2291_v41, %v1437_v61 }
0x3e6f   :  { %2193 = vrot.lane.b32.xlu1 %v1438_v60, %s2758_s8 }
0x3eac   :  { %v2186_v42 = vpop.permute.xlu1 %2185 }
0x3ead   :  { %v2188_v56 = vsel %vm1434_vm3, %v2186_v42, 0.0 }
0x3eae   :  { %2189 = vadd.xlane.f32.xlu0 %v2188_v56 }
0x3ebd   :  { %v1981_v7 = vpop.xlane.xlu0 %1980 }
0x3ebe   :  { %v1982_v10 = vadd.f32 %v2313_v44, %v1981_v7 }
0x3ec0   :  { %2201 = vrot.lane.b32.xlu1 %v1982_v10, %s2759_s3 }
0x3eeb   :  { %v1756_v12 = vpop.xlane.xlu1 %1755 }
0x3eec   :  { %v1757_v15 = vadd.f32 %v2313_v44, %v1756_v12 }
0x3eee   :  { %2197 = vrot.lane.b32.xlu0 %v1757_v15, %s2760_s25 }
0x3eef   :  { %v2194_v51 = vpop.permute.xlu1 %2193 }
0x3f32   :  { %v2202_v18 = vpop.permute.xlu1 %2201 }
0x3f3b   :  { %v2190_v14 = vpop.xlane.xlu0 %2189 }
0x3f3c   :  { %v2191_v50 = vadd.f32 %v2313_v44, %v2190_v14 }
0x3f3e   :  { %2205 = vrot.lane.b32.xlu1 %v2191_v50, %s2761_s11 }
0x3f60   :  { %v2198_v17 = vpop.permute.xlu0 %2197 }
0x3f61   :  { %v2209_v62 = vsel %vm2208_vm4, %v2194_v51, %v2198_v17 }
0x3f62   :  { %v2211_v3 = vsel %vm2210_vm5, %v2209_v62, %v2202_v18 }
0x3fb0   :  { %v2206_v32 = vpop.permute.xlu1 %2205 }
0x3fb1   :  { %v2213_v21 = vsel %vm2212_vm6, %v2211_v3, %v2206_v32 }
0x3fb2   :  { %2215 = vst.msk [vmem:[#allocation7] sm:$0x3] %vm2214_vm7, %v2213_v21 }
0x3fb3   :  { %2730 = shalt.err (!%p2727_p6)
}
0x3fb4   :  { %s2731_s2 = scalar_lea.hbm %s3359_s4, 32 }
0x3fb5   :  { %p2732_p7 = scmp.ne.s32.totalorder %s3359_s4, %s2731_s2  ;;  %p2735_p8 = scmp.lt.u32.totalorder %s2731_s2, %s3359_s4 }
0x3fb7   :  { %p2737_p9 = pnand %p2735_p8, %p2732_p7 }
0x3fb9   :  { %2740 = shalt.err (!%p2737_p9)
}
0x3fba   :  { %2225 = dma.vmem_to_hbm [thread:$0]  %s2223_s1, 32, %s3359_s4, [#allocation4]  }
0x3fbb   :  { %2745 = dma.done.wait [#allocation4], 32  }
0x3fbc   :  { %2746 = vsyncadd [#allocation4], 4294967264 }
0x3fbd   :  { %2229 = vsyncpa [#allocation3], 1 }
0x3fbe   :  { %2230 = vsyncpa [#allocation6], 1 }
0x3fbf   :  { %2231 = vsyncpa [#allocation4], 1 }

</bundles_post_ra>
